<compile_context>
chip_gen: v7x
topology: tpu7x:2x2x1
jax: 0.10.0
libtpu: 0.0.40
codegen_flags: <defaults>
</compile_context>

<pallas_src>
import functools

import jax
import jax.numpy as jnp
from jax import lax
from jax.experimental import pallas as pl
from jax.experimental.pallas import tpu as pltpu


# ----------------------------------------------------------------------------
# Fused Pallas kernel: conv3x3+ReLU -> merged [adv|val] MLPs -> dueling combine
# ----------------------------------------------------------------------------
def _dueling_fused_kernel(x_ref, wc_ref, bc_ref, w1_ref, b1_ref, w2_ref, b2_ref,
                          q_ref, *, B, KH, KW, W, Cout, A):
    """All operands are whole-array VMEM blocks; one kernel invocation.

    x_ref : (B, C, H*W)         input image; rows = channels, lanes = pixels
    wc_ref: (KH*KW, Cout, C)    conv weight, one (Cout, C) slab per tap
    bc_ref: (Cout, 1)           conv bias
    w1_ref: (Cout, H*W, 2*HID)  [wa1|wv1] re-indexed to the padded H*W frame
                                (zero rows at out-of-range conv positions)
    b1_ref: (1, 2*HID)          [ba1|bv1]
    w2_ref: (2*HID, A+1)        block-diag [[wa2, 0], [0, wv2]]
    b2_ref: (1, A+1)            [ba2|bv2]
    q_ref : (B, A)              dueling Q-values
    """
    hw = x_ref.shape[-1]

    # ---- Conv2d(3x3, VALID) + ReLU ------------------------------------------
    # Tap (di, dj) contributes w[:, :, di, dj] @ x[:, p + di*W + dj]; the
    # shifted view is a lane rotation.  Wrapped / out-of-range output
    # positions carry finite garbage that is zero-weighted by w1 below.
    convs = []
    for b in range(B):
        xb = x_ref[b]                                          # (C, H*W)
        acc = jnp.zeros((Cout, hw), jnp.float32)
        for di in range(KH):
            for dj in range(KW):
                s = di * W + dj
                xs = xb if s == 0 else jnp.concatenate(
                    [xb[:, s:], xb[:, :s]], axis=1)            # left-rotate by s
                acc = acc + jnp.dot(wc_ref[di * KW + dj], xs,
                                    preferred_element_type=jnp.float32)
        convs.append(jnp.maximum(acc + bc_ref[...], 0.0))      # (Cout, H*W)

    # ---- merged adv|val first Linear + ReLU ----------------------------------
    # feat.view(B,-1) @ [wa1|wv1] without flattening: accumulate over conv
    # channels with (B, H*W) x (H*W, 2*HID) matmuls against contiguous w1 blocks.
    nh = w1_ref.shape[-1]
    h = jnp.zeros((B, nh), jnp.float32)
    for co in range(Cout):
        c_co = jnp.concatenate(
            [convs[b][co:co + 1, :] for b in range(B)], axis=0)  # (B, H*W)
        h = h + jnp.dot(c_co, w1_ref[co], preferred_element_type=jnp.float32)
    h = jnp.maximum(h + b1_ref[...], 0.0)                      # (B, 2*HID)

    # ---- merged second Linear (block-diagonal) + dueling combine -------------
    o = jnp.dot(h, w2_ref[...], preferred_element_type=jnp.float32) + b2_ref[...]
    adv = o[:, :A]                                             # (B, A)
    val = o[:, A:A + 1]                                        # (B, 1)
    q_ref[...] = val - jnp.mean(adv, axis=1, keepdims=True) + adv


# ----------------------------------------------------------------------------
# One-time weight repacking (PyTorch layout -> kernel layout)
# ----------------------------------------------------------------------------
def prepare_params(params, img_hw):
    H, W = img_hw
    conv_w = params["conv_w"]
    Cout, C, KH, KW = conv_w.shape
    OH, OW = H - KH + 1, W - KW + 1
    HID = params["wa1"].shape[1]
    A = params["wa2"].shape[1]

    # conv weight: one (Cout, C) slab per (di, dj) tap
    wc = jnp.transpose(conv_w, (2, 3, 0, 1)).reshape(KH * KW, Cout, C)
    bc = params["conv_b"].reshape(Cout, 1)

    # merged adv|val first layer.  PyTorch flatten index is co*(OH*OW)+oh*OW+ow;
    # re-index rows to the padded co*(H*W)+oh*W+ow frame, zero rows at invalid
    # (oh >= OH or ow >= OW) positions.
    w1 = jnp.concatenate([params["wa1"], params["wv1"]], axis=1)   # (F, 2*HID)
    w1 = w1.reshape(Cout, OH, OW, 2 * HID)
    w1 = jnp.zeros((Cout, H, W, 2 * HID), w1.dtype).at[:, :OH, :OW, :].set(w1)
    w1 = w1.reshape(Cout, H * W, 2 * HID)
    b1 = jnp.concatenate([params["ba1"], params["bv1"]], axis=1)   # (1, 2*HID)

    # merged block-diagonal second layer: cols [0:A] = adv, col A = val
    w2 = jnp.zeros((2 * HID, A + 1), jnp.float32)
    w2 = w2.at[:HID, :A].set(params["wa2"])
    w2 = w2.at[HID:, A:].set(params["wv2"])
    b2 = jnp.concatenate([params["ba2"], params["bv2"]], axis=1)   # (1, A+1)

    meta = dict(KH=KH, KW=KW, Cout=Cout, A=A)
    kparams = dict(wc=wc, bc=bc, w1=w1, b1=b1, w2=w2, b2=b2)
    return kparams, meta


# ----------------------------------------------------------------------------
# Forward wrapper
# ----------------------------------------------------------------------------
def dueling_network_forward(x, kparams, *, meta):
    """x: (B, C, H, W) NCHW, values in [0, 1].  Returns q: (B, A)."""
    B, C, H, W = x.shape
    A = meta["A"]
    x2 = x.reshape(B, C, H * W)     # layout-preserving; no data movement

    kernel = functools.partial(
        _dueling_fused_kernel,
        B=B, KH=meta["KH"], KW=meta["KW"], W=W, Cout=meta["Cout"], A=A)

    # NOTE(perf): at this problem size a single un-gridded invocation is the
    # cheapest (one launch, ~0.6 MiB of VMEM).  For large batch, grid over the
    # batch axis with dimension_semantics=("parallel",) so blocks pipeline and
    # shard across TensorCores while the (resident) weights are not re-fetched.
    vmem_specs = [pl.BlockSpec(memory_space=pltpu.MemorySpace.VMEM)
                  for _ in range(7)]
    return pl.pallas_call(
        kernel,
        out_shape=jax.ShapeDtypeStruct((B, A), jnp.float32),
        in_specs=vmem_specs,
        out_specs=pl.BlockSpec(memory_space=pltpu.MemorySpace.VMEM),
    )(x2, kparams["wc"], kparams["bc"], kparams["w1"], kparams["b1"],
      kparams["w2"], kparams["b2"])


# ----------------------------------------------------------------------------
# Deterministic parameter init (PyTorch-like uniform(-1/sqrt(fan_in), ...))
# ----------------------------------------------------------------------------
def init_params(key, C, Cout, KH, KW, F, H, A):
    ks = jax.random.split(key, 10)

    def unif(k, shape, fan_in):
        bound = 1.0 / jnp.sqrt(fan_in)
        return jax.random.uniform(k, shape, jnp.float32, -bound, bound)

    conv_fan = C * KH * KW
    return {
        "conv_w": unif(ks[0], (Cout, C, KH, KW), conv_fan),
        "conv_b": unif(ks[1], (Cout,), conv_fan),
        "wa1": unif(ks[2], (F, H), F),
        "ba1": unif(ks[3], (1, H), F),
        "wa2": unif(ks[4], (H, A), H),
        "ba2": unif(ks[5], (1, A), H),
        "wv1": unif(ks[6], (F, H), F),
        "bv1": unif(ks[7], (1, H), F),
        "wv2": unif(ks[8], (H, 1), H),
        "bv2": unif(ks[9], (1, 1), H),
    }


# ----------------------------------------------------------------------------
# Pure-JAX reference (original PyTorch layout) for correctness check
# ----------------------------------------------------------------------------
def reference_forward(x, p):
    conv = lax.conv_general_dilated(
        x, p["conv_w"], window_strides=(1, 1), padding="VALID",
        dimension_numbers=("NCHW", "OIHW", "NCHW"))
    conv = jnp.maximum(conv + p["conv_b"][None, :, None, None], 0.0)
    feat = conv.reshape(x.shape[0], -1)
    h_adv = jnp.maximum(feat @ p["wa1"] + p["ba1"], 0.0)
    adv = h_adv @ p["wa2"] + p["ba2"]
    h_val = jnp.maximum(feat @ p["wv1"] + p["bv1"], 0.0)
    val = h_val @ p["wv2"] + p["bv2"]
    return val - adv.mean(axis=1, keepdims=True) + adv


if __name__ == "__main__":
    B, C, Himg, Wimg = 2, 4, 16, 16
    Cout, KH, KW = 8, 3, 3
    OH, OW = Himg - KH + 1, Wimg - KW + 1
    F = Cout * OH * OW          # 8 * 14 * 14 = 1568
    HID, A = 32, 6              # hidden width, number of actions

    key = jax.random.PRNGKey(0)
    kx, kp = jax.random.split(key)
    # inputs in [0, 1] -> satisfies the module's `x.max() <= 1.0`
    x = jax.random.uniform(kx, (B, C, Himg, Wimg), jnp.float32, 0.0, 1.0)
    params = init_params(kp, C, Cout, KH, KW, F, HID, A)

    # PyTorch forward asserts x.data.max() <= 1.0; enforced host-side here.
    assert float(jnp.max(x)) <= 1.0

    kparams, meta = prepare_params(params, (Himg, Wimg))   # one-time weight prep
    fwd = jax.jit(functools.partial(dueling_network_forward, meta=meta))
    q = jax.block_until_ready(fwd(x, kparams))

    q_ref = reference_forward(x, params)
    assert q.shape == (B, A)
    assert jnp.allclose(q, q_ref, atol=1e-4, rtol=1e-4), "mismatch vs reference"

    print("KERNEL_OK")
</pallas_src>

<mosaic_0001>
module attributes {stable_mosaic.version = 11 : i64} {
  func.func @_dueling_fused_kernel(%arg0: memref<2x4x256xf32, #tpu.memory_space<vmem>>, %arg1: memref<9x8x4xf32, #tpu.memory_space<vmem>>, %arg2: memref<8x1xf32, #tpu.memory_space<vmem>>, %arg3: memref<8x256x64xf32, #tpu.memory_space<vmem>>, %arg4: memref<1x64xf32, #tpu.memory_space<vmem>>, %arg5: memref<64x7xf32, #tpu.memory_space<vmem>>, %arg6: memref<1x7xf32, #tpu.memory_space<vmem>>, %arg7: memref<2x6xf32, #tpu.memory_space<vmem>>) attributes {dimension_semantics = [], scalar_prefetch = 0 : i64, scratch_operands = 0 : i64, tpu.core_type = #tpu.core_type<tc>} {
    %c0 = arith.constant 0 : index
    %c0_0 = arith.constant 0 : index
    %c0_1 = arith.constant 0 : index
    %0 = vector.load %arg0[%c0, %c0_0, %c0_1] : memref<2x4x256xf32, #tpu.memory_space<vmem>>, vector<1x4x256xf32>
    %1 = vector.shape_cast %0 : vector<1x4x256xf32> to vector<4x256xf32>
    %cst = arith.constant 0.000000e+00 : f32
    %2 = vector.broadcast %cst : f32 to vector<8x256xf32>
    %c0_2 = arith.constant 0 : index
    %c0_3 = arith.constant 0 : index
    %c0_4 = arith.constant 0 : index
    %3 = vector.load %arg1[%c0_2, %c0_3, %c0_4] : memref<9x8x4xf32, #tpu.memory_space<vmem>>, vector<1x8x4xf32>
    %4 = vector.shape_cast %3 : vector<1x8x4xf32> to vector<8x4xf32>
    %cst_5 = arith.constant dense<0.000000e+00> : vector<8x256xf32>
    %5 = tpu.matmul %4, %1, %cst_5 {dimension_numbers = #tpu.dot_dimension_numbers<[1], [0], [0], [1], [0, 0, 1, 1], [], []>} : vector<8x4xf32>, vector<4x256xf32>, vector<8x256xf32> -> vector<8x256xf32>
    %6 = arith.addf %2, %5 : vector<8x256xf32>
    %7 = vector.extract_strided_slice %1 {offsets = [0, 1], sizes = [4, 255], strides = [1, 1]} : vector<4x256xf32> to vector<4x255xf32>
    %8 = vector.extract_strided_slice %1 {offsets = [0, 0], sizes = [4, 1], strides = [1, 1]} : vector<4x256xf32> to vector<4x1xf32>
    %9 = tpu.concatenate %7, %8 in 1 : vector<4x255xf32>, vector<4x1xf32> -> vector<4x256xf32>
    %c1 = arith.constant 1 : index
    %c0_6 = arith.constant 0 : index
    %c0_7 = arith.constant 0 : index
    %10 = vector.load %arg1[%c1, %c0_6, %c0_7] : memref<9x8x4xf32, #tpu.memory_space<vmem>>, vector<1x8x4xf32>
    %11 = vector.shape_cast %10 : vector<1x8x4xf32> to vector<8x4xf32>
    %cst_8 = arith.constant dense<0.000000e+00> : vector<8x256xf32>
    %12 = tpu.matmul %11, %9, %cst_8 {dimension_numbers = #tpu.dot_dimension_numbers<[1], [0], [0], [1], [0, 0, 1, 1], [], []>} : vector<8x4xf32>, vector<4x256xf32>, vector<8x256xf32> -> vector<8x256xf32>
    %13 = arith.addf %6, %12 : vector<8x256xf32>
    %14 = vector.extract_strided_slice %1 {offsets = [0, 2], sizes = [4, 254], strides = [1, 1]} : vector<4x256xf32> to vector<4x254xf32>
    %15 = vector.extract_strided_slice %1 {offsets = [0, 0], sizes = [4, 2], strides = [1, 1]} : vector<4x256xf32> to vector<4x2xf32>
    %16 = tpu.concatenate %14, %15 in 1 : vector<4x254xf32>, vector<4x2xf32> -> vector<4x256xf32>
    %c2 = arith.constant 2 : index
    %c0_9 = arith.constant 0 : index
    %c0_10 = arith.constant 0 : index
    %17 = vector.load %arg1[%c2, %c0_9, %c0_10] : memref<9x8x4xf32, #tpu.memory_space<vmem>>, vector<1x8x4xf32>
    %18 = vector.shape_cast %17 : vector<1x8x4xf32> to vector<8x4xf32>
    %cst_11 = arith.constant dense<0.000000e+00> : vector<8x256xf32>
    %19 = tpu.matmul %18, %16, %cst_11 {dimension_numbers = #tpu.dot_dimension_numbers<[1], [0], [0], [1], [0, 0, 1, 1], [], []>} : vector<8x4xf32>, vector<4x256xf32>, vector<8x256xf32> -> vector<8x256xf32>
    %20 = arith.addf %13, %19 : vector<8x256xf32>
    %21 = vector.extract_strided_slice %1 {offsets = [0, 16], sizes = [4, 240], strides = [1, 1]} : vector<4x256xf32> to vector<4x240xf32>
    %22 = vector.extract_strided_slice %1 {offsets = [0, 0], sizes = [4, 16], strides = [1, 1]} : vector<4x256xf32> to vector<4x16xf32>
    %23 = tpu.concatenate %21, %22 in 1 : vector<4x240xf32>, vector<4x16xf32> -> vector<4x256xf32>
    %c3 = arith.constant 3 : index
    %c0_12 = arith.constant 0 : index
    %c0_13 = arith.constant 0 : index
    %24 = vector.load %arg1[%c3, %c0_12, %c0_13] : memref<9x8x4xf32, #tpu.memory_space<vmem>>, vector<1x8x4xf32>
    %25 = vector.shape_cast %24 : vector<1x8x4xf32> to vector<8x4xf32>
    %cst_14 = arith.constant dense<0.000000e+00> : vector<8x256xf32>
    %26 = tpu.matmul %25, %23, %cst_14 {dimension_numbers = #tpu.dot_dimension_numbers<[1], [0], [0], [1], [0, 0, 1, 1], [], []>} : vector<8x4xf32>, vector<4x256xf32>, vector<8x256xf32> -> vector<8x256xf32>
    %27 = arith.addf %20, %26 : vector<8x256xf32>
    %28 = vector.extract_strided_slice %1 {offsets = [0, 17], sizes = [4, 239], strides = [1, 1]} : vector<4x256xf32> to vector<4x239xf32>
    %29 = vector.extract_strided_slice %1 {offsets = [0, 0], sizes = [4, 17], strides = [1, 1]} : vector<4x256xf32> to vector<4x17xf32>
    %30 = tpu.concatenate %28, %29 in 1 : vector<4x239xf32>, vector<4x17xf32> -> vector<4x256xf32>
    %c4 = arith.constant 4 : index
    %c0_15 = arith.constant 0 : index
    %c0_16 = arith.constant 0 : index
    %31 = vector.load %arg1[%c4, %c0_15, %c0_16] : memref<9x8x4xf32, #tpu.memory_space<vmem>>, vector<1x8x4xf32>
    %32 = vector.shape_cast %31 : vector<1x8x4xf32> to vector<8x4xf32>
    %cst_17 = arith.constant dense<0.000000e+00> : vector<8x256xf32>
    %33 = tpu.matmul %32, %30, %cst_17 {dimension_numbers = #tpu.dot_dimension_numbers<[1], [0], [0], [1], [0, 0, 1, 1], [], []>} : vector<8x4xf32>, vector<4x256xf32>, vector<8x256xf32> -> vector<8x256xf32>
    %34 = arith.addf %27, %33 : vector<8x256xf32>
    %35 = vector.extract_strided_slice %1 {offsets = [0, 18], sizes = [4, 238], strides = [1, 1]} : vector<4x256xf32> to vector<4x238xf32>
    %36 = vector.extract_strided_slice %1 {offsets = [0, 0], sizes = [4, 18], strides = [1, 1]} : vector<4x256xf32> to vector<4x18xf32>
    %37 = tpu.concatenate %35, %36 in 1 : vector<4x238xf32>, vector<4x18xf32> -> vector<4x256xf32>
    %c5 = arith.constant 5 : index
    %c0_18 = arith.constant 0 : index
    %c0_19 = arith.constant 0 : index
    %38 = vector.load %arg1[%c5, %c0_18, %c0_19] : memref<9x8x4xf32, #tpu.memory_space<vmem>>, vector<1x8x4xf32>
    %39 = vector.shape_cast %38 : vector<1x8x4xf32> to vector<8x4xf32>
    %cst_20 = arith.constant dense<0.000000e+00> : vector<8x256xf32>
    %40 = tpu.matmul %39, %37, %cst_20 {dimension_numbers = #tpu.dot_dimension_numbers<[1], [0], [0], [1], [0, 0, 1, 1], [], []>} : vector<8x4xf32>, vector<4x256xf32>, vector<8x256xf32> -> vector<8x256xf32>
    %41 = arith.addf %34, %40 : vector<8x256xf32>
    %42 = vector.extract_strided_slice %1 {offsets = [0, 32], sizes = [4, 224], strides = [1, 1]} : vector<4x256xf32> to vector<4x224xf32>
    %43 = vector.extract_strided_slice %1 {offsets = [0, 0], sizes = [4, 32], strides = [1, 1]} : vector<4x256xf32> to vector<4x32xf32>
    %44 = tpu.concatenate %42, %43 in 1 : vector<4x224xf32>, vector<4x32xf32> -> vector<4x256xf32>
    %c6 = arith.constant 6 : index
    %c0_21 = arith.constant 0 : index
    %c0_22 = arith.constant 0 : index
    %45 = vector.load %arg1[%c6, %c0_21, %c0_22] : memref<9x8x4xf32, #tpu.memory_space<vmem>>, vector<1x8x4xf32>
    %46 = vector.shape_cast %45 : vector<1x8x4xf32> to vector<8x4xf32>
    %cst_23 = arith.constant dense<0.000000e+00> : vector<8x256xf32>
    %47 = tpu.matmul %46, %44, %cst_23 {dimension_numbers = #tpu.dot_dimension_numbers<[1], [0], [0], [1], [0, 0, 1, 1], [], []>} : vector<8x4xf32>, vector<4x256xf32>, vector<8x256xf32> -> vector<8x256xf32>
    %48 = arith.addf %41, %47 : vector<8x256xf32>
    %49 = vector.extract_strided_slice %1 {offsets = [0, 33], sizes = [4, 223], strides = [1, 1]} : vector<4x256xf32> to vector<4x223xf32>
    %50 = vector.extract_strided_slice %1 {offsets = [0, 0], sizes = [4, 33], strides = [1, 1]} : vector<4x256xf32> to vector<4x33xf32>
    %51 = tpu.concatenate %49, %50 in 1 : vector<4x223xf32>, vector<4x33xf32> -> vector<4x256xf32>
    %c7 = arith.constant 7 : index
    %c0_24 = arith.constant 0 : index
    %c0_25 = arith.constant 0 : index
    %52 = vector.load %arg1[%c7, %c0_24, %c0_25] : memref<9x8x4xf32, #tpu.memory_space<vmem>>, vector<1x8x4xf32>
    %53 = vector.shape_cast %52 : vector<1x8x4xf32> to vector<8x4xf32>
    %cst_26 = arith.constant dense<0.000000e+00> : vector<8x256xf32>
    %54 = tpu.matmul %53, %51, %cst_26 {dimension_numbers = #tpu.dot_dimension_numbers<[1], [0], [0], [1], [0, 0, 1, 1], [], []>} : vector<8x4xf32>, vector<4x256xf32>, vector<8x256xf32> -> vector<8x256xf32>
    %55 = arith.addf %48, %54 : vector<8x256xf32>
    %56 = vector.extract_strided_slice %1 {offsets = [0, 34], sizes = [4, 222], strides = [1, 1]} : vector<4x256xf32> to vector<4x222xf32>
    %57 = vector.extract_strided_slice %1 {offsets = [0, 0], sizes = [4, 34], strides = [1, 1]} : vector<4x256xf32> to vector<4x34xf32>
    %58 = tpu.concatenate %56, %57 in 1 : vector<4x222xf32>, vector<4x34xf32> -> vector<4x256xf32>
    %c8 = arith.constant 8 : index
    %c0_27 = arith.constant 0 : index
    %c0_28 = arith.constant 0 : index
    %59 = vector.load %arg1[%c8, %c0_27, %c0_28] : memref<9x8x4xf32, #tpu.memory_space<vmem>>, vector<1x8x4xf32>
    %60 = vector.shape_cast %59 : vector<1x8x4xf32> to vector<8x4xf32>
    %cst_29 = arith.constant dense<0.000000e+00> : vector<8x256xf32>
    %61 = tpu.matmul %60, %58, %cst_29 {dimension_numbers = #tpu.dot_dimension_numbers<[1], [0], [0], [1], [0, 0, 1, 1], [], []>} : vector<8x4xf32>, vector<4x256xf32>, vector<8x256xf32> -> vector<8x256xf32>
    %62 = arith.addf %55, %61 : vector<8x256xf32>
    %c0_30 = arith.constant 0 : index
    %c0_31 = arith.constant 0 : index
    %63 = vector.load %arg2[%c0_30, %c0_31] : memref<8x1xf32, #tpu.memory_space<vmem>>, vector<8x1xf32>
    %64 = vector.broadcast %63 : vector<8x1xf32> to vector<8x256xf32>
    %65 = arith.addf %62, %64 : vector<8x256xf32>
    %cst_32 = arith.constant 0.000000e+00 : f32
    %66 = vector.broadcast %cst_32 : f32 to vector<8x256xf32>
    %67 = arith.maximumf %65, %66 : vector<8x256xf32>
    %c1_33 = arith.constant 1 : index
    %c0_34 = arith.constant 0 : index
    %c0_35 = arith.constant 0 : index
    %68 = vector.load %arg0[%c1_33, %c0_34, %c0_35] : memref<2x4x256xf32, #tpu.memory_space<vmem>>, vector<1x4x256xf32>
    %69 = vector.shape_cast %68 : vector<1x4x256xf32> to vector<4x256xf32>
    %cst_36 = arith.constant 0.000000e+00 : f32
    %70 = vector.broadcast %cst_36 : f32 to vector<8x256xf32>
    %c0_37 = arith.constant 0 : index
    %c0_38 = arith.constant 0 : index
    %c0_39 = arith.constant 0 : index
    %71 = vector.load %arg1[%c0_37, %c0_38, %c0_39] : memref<9x8x4xf32, #tpu.memory_space<vmem>>, vector<1x8x4xf32>
    %72 = vector.shape_cast %71 : vector<1x8x4xf32> to vector<8x4xf32>
    %cst_40 = arith.constant dense<0.000000e+00> : vector<8x256xf32>
    %73 = tpu.matmul %72, %69, %cst_40 {dimension_numbers = #tpu.dot_dimension_numbers<[1], [0], [0], [1], [0, 0, 1, 1], [], []>} : vector<8x4xf32>, vector<4x256xf32>, vector<8x256xf32> -> vector<8x256xf32>
    %74 = arith.addf %70, %73 : vector<8x256xf32>
    %75 = vector.extract_strided_slice %69 {offsets = [0, 1], sizes = [4, 255], strides = [1, 1]} : vector<4x256xf32> to vector<4x255xf32>
    %76 = vector.extract_strided_slice %69 {offsets = [0, 0], sizes = [4, 1], strides = [1, 1]} : vector<4x256xf32> to vector<4x1xf32>
    %77 = tpu.concatenate %75, %76 in 1 : vector<4x255xf32>, vector<4x1xf32> -> vector<4x256xf32>
    %c1_41 = arith.constant 1 : index
    %c0_42 = arith.constant 0 : index
    %c0_43 = arith.constant 0 : index
    %78 = vector.load %arg1[%c1_41, %c0_42, %c0_43] : memref<9x8x4xf32, #tpu.memory_space<vmem>>, vector<1x8x4xf32>
    %79 = vector.shape_cast %78 : vector<1x8x4xf32> to vector<8x4xf32>
    %cst_44 = arith.constant dense<0.000000e+00> : vector<8x256xf32>
    %80 = tpu.matmul %79, %77, %cst_44 {dimension_numbers = #tpu.dot_dimension_numbers<[1], [0], [0], [1], [0, 0, 1, 1], [], []>} : vector<8x4xf32>, vector<4x256xf32>, vector<8x256xf32> -> vector<8x256xf32>
    %81 = arith.addf %74, %80 : vector<8x256xf32>
    %82 = vector.extract_strided_slice %69 {offsets = [0, 2], sizes = [4, 254], strides = [1, 1]} : vector<4x256xf32> to vector<4x254xf32>
    %83 = vector.extract_strided_slice %69 {offsets = [0, 0], sizes = [4, 2], strides = [1, 1]} : vector<4x256xf32> to vector<4x2xf32>
    %84 = tpu.concatenate %82, %83 in 1 : vector<4x254xf32>, vector<4x2xf32> -> vector<4x256xf32>
    %c2_45 = arith.constant 2 : index
    %c0_46 = arith.constant 0 : index
    %c0_47 = arith.constant 0 : index
    %85 = vector.load %arg1[%c2_45, %c0_46, %c0_47] : memref<9x8x4xf32, #tpu.memory_space<vmem>>, vector<1x8x4xf32>
    %86 = vector.shape_cast %85 : vector<1x8x4xf32> to vector<8x4xf32>
    %cst_48 = arith.constant dense<0.000000e+00> : vector<8x256xf32>
    %87 = tpu.matmul %86, %84, %cst_48 {dimension_numbers = #tpu.dot_dimension_numbers<[1], [0], [0], [1], [0, 0, 1, 1], [], []>} : vector<8x4xf32>, vector<4x256xf32>, vector<8x256xf32> -> vector<8x256xf32>
    %88 = arith.addf %81, %87 : vector<8x256xf32>
    %89 = vector.extract_strided_slice %69 {offsets = [0, 16], sizes = [4, 240], strides = [1, 1]} : vector<4x256xf32> to vector<4x240xf32>
    %90 = vector.extract_strided_slice %69 {offsets = [0, 0], sizes = [4, 16], strides = [1, 1]} : vector<4x256xf32> to vector<4x16xf32>
    %91 = tpu.concatenate %89, %90 in 1 : vector<4x240xf32>, vector<4x16xf32> -> vector<4x256xf32>
    %c3_49 = arith.constant 3 : index
    %c0_50 = arith.constant 0 : index
    %c0_51 = arith.constant 0 : index
    %92 = vector.load %arg1[%c3_49, %c0_50, %c0_51] : memref<9x8x4xf32, #tpu.memory_space<vmem>>, vector<1x8x4xf32>
    %93 = vector.shape_cast %92 : vector<1x8x4xf32> to vector<8x4xf32>
    %cst_52 = arith.constant dense<0.000000e+00> : vector<8x256xf32>
    %94 = tpu.matmul %93, %91, %cst_52 {dimension_numbers = #tpu.dot_dimension_numbers<[1], [0], [0], [1], [0, 0, 1, 1], [], []>} : vector<8x4xf32>, vector<4x256xf32>, vector<8x256xf32> -> vector<8x256xf32>
    %95 = arith.addf %88, %94 : vector<8x256xf32>
    %96 = vector.extract_strided_slice %69 {offsets = [0, 17], sizes = [4, 239], strides = [1, 1]} : vector<4x256xf32> to vector<4x239xf32>
    %97 = vector.extract_strided_slice %69 {offsets = [0, 0], sizes = [4, 17], strides = [1, 1]} : vector<4x256xf32> to vector<4x17xf32>
    %98 = tpu.concatenate %96, %97 in 1 : vector<4x239xf32>, vector<4x17xf32> -> vector<4x256xf32>
    %c4_53 = arith.constant 4 : index
    %c0_54 = arith.constant 0 : index
    %c0_55 = arith.constant 0 : index
    %99 = vector.load %arg1[%c4_53, %c0_54, %c0_55] : memref<9x8x4xf32, #tpu.memory_space<vmem>>, vector<1x8x4xf32>
    %100 = vector.shape_cast %99 : vector<1x8x4xf32> to vector<8x4xf32>
    %cst_56 = arith.constant dense<0.000000e+00> : vector<8x256xf32>
    %101 = tpu.matmul %100, %98, %cst_56 {dimension_numbers = #tpu.dot_dimension_numbers<[1], [0], [0], [1], [0, 0, 1, 1], [], []>} : vector<8x4xf32>, vector<4x256xf32>, vector<8x256xf32> -> vector<8x256xf32>
    %102 = arith.addf %95, %101 : vector<8x256xf32>
    %103 = vector.extract_strided_slice %69 {offsets = [0, 18], sizes = [4, 238], strides = [1, 1]} : vector<4x256xf32> to vector<4x238xf32>
    %104 = vector.extract_strided_slice %69 {offsets = [0, 0], sizes = [4, 18], strides = [1, 1]} : vector<4x256xf32> to vector<4x18xf32>
    %105 = tpu.concatenate %103, %104 in 1 : vector<4x238xf32>, vector<4x18xf32> -> vector<4x256xf32>
    %c5_57 = arith.constant 5 : index
    %c0_58 = arith.constant 0 : index
    %c0_59 = arith.constant 0 : index
    %106 = vector.load %arg1[%c5_57, %c0_58, %c0_59] : memref<9x8x4xf32, #tpu.memory_space<vmem>>, vector<1x8x4xf32>
    %107 = vector.shape_cast %106 : vector<1x8x4xf32> to vector<8x4xf32>
    %cst_60 = arith.constant dense<0.000000e+00> : vector<8x256xf32>
    %108 = tpu.matmul %107, %105, %cst_60 {dimension_numbers = #tpu.dot_dimension_numbers<[1], [0], [0], [1], [0, 0, 1, 1], [], []>} : vector<8x4xf32>, vector<4x256xf32>, vector<8x256xf32> -> vector<8x256xf32>
    %109 = arith.addf %102, %108 : vector<8x256xf32>
    %110 = vector.extract_strided_slice %69 {offsets = [0, 32], sizes = [4, 224], strides = [1, 1]} : vector<4x256xf32> to vector<4x224xf32>
    %111 = vector.extract_strided_slice %69 {offsets = [0, 0], sizes = [4, 32], strides = [1, 1]} : vector<4x256xf32> to vector<4x32xf32>
    %112 = tpu.concatenate %110, %111 in 1 : vector<4x224xf32>, vector<4x32xf32> -> vector<4x256xf32>
    %c6_61 = arith.constant 6 : index
    %c0_62 = arith.constant 0 : index
    %c0_63 = arith.constant 0 : index
    %113 = vector.load %arg1[%c6_61, %c0_62, %c0_63] : memref<9x8x4xf32, #tpu.memory_space<vmem>>, vector<1x8x4xf32>
    %114 = vector.shape_cast %113 : vector<1x8x4xf32> to vector<8x4xf32>
    %cst_64 = arith.constant dense<0.000000e+00> : vector<8x256xf32>
    %115 = tpu.matmul %114, %112, %cst_64 {dimension_numbers = #tpu.dot_dimension_numbers<[1], [0], [0], [1], [0, 0, 1, 1], [], []>} : vector<8x4xf32>, vector<4x256xf32>, vector<8x256xf32> -> vector<8x256xf32>
    %116 = arith.addf %109, %115 : vector<8x256xf32>
    %117 = vector.extract_strided_slice %69 {offsets = [0, 33], sizes = [4, 223], strides = [1, 1]} : vector<4x256xf32> to vector<4x223xf32>
    %118 = vector.extract_strided_slice %69 {offsets = [0, 0], sizes = [4, 33], strides = [1, 1]} : vector<4x256xf32> to vector<4x33xf32>
    %119 = tpu.concatenate %117, %118 in 1 : vector<4x223xf32>, vector<4x33xf32> -> vector<4x256xf32>
    %c7_65 = arith.constant 7 : index
    %c0_66 = arith.constant 0 : index
    %c0_67 = arith.constant 0 : index
    %120 = vector.load %arg1[%c7_65, %c0_66, %c0_67] : memref<9x8x4xf32, #tpu.memory_space<vmem>>, vector<1x8x4xf32>
    %121 = vector.shape_cast %120 : vector<1x8x4xf32> to vector<8x4xf32>
    %cst_68 = arith.constant dense<0.000000e+00> : vector<8x256xf32>
    %122 = tpu.matmul %121, %119, %cst_68 {dimension_numbers = #tpu.dot_dimension_numbers<[1], [0], [0], [1], [0, 0, 1, 1], [], []>} : vector<8x4xf32>, vector<4x256xf32>, vector<8x256xf32> -> vector<8x256xf32>
    %123 = arith.addf %116, %122 : vector<8x256xf32>
    %124 = vector.extract_strided_slice %69 {offsets = [0, 34], sizes = [4, 222], strides = [1, 1]} : vector<4x256xf32> to vector<4x222xf32>
    %125 = vector.extract_strided_slice %69 {offsets = [0, 0], sizes = [4, 34], strides = [1, 1]} : vector<4x256xf32> to vector<4x34xf32>
    %126 = tpu.concatenate %124, %125 in 1 : vector<4x222xf32>, vector<4x34xf32> -> vector<4x256xf32>
    %c8_69 = arith.constant 8 : index
    %c0_70 = arith.constant 0 : index
    %c0_71 = arith.constant 0 : index
    %127 = vector.load %arg1[%c8_69, %c0_70, %c0_71] : memref<9x8x4xf32, #tpu.memory_space<vmem>>, vector<1x8x4xf32>
    %128 = vector.shape_cast %127 : vector<1x8x4xf32> to vector<8x4xf32>
    %cst_72 = arith.constant dense<0.000000e+00> : vector<8x256xf32>
    %129 = tpu.matmul %128, %126, %cst_72 {dimension_numbers = #tpu.dot_dimension_numbers<[1], [0], [0], [1], [0, 0, 1, 1], [], []>} : vector<8x4xf32>, vector<4x256xf32>, vector<8x256xf32> -> vector<8x256xf32>
    %130 = arith.addf %123, %129 : vector<8x256xf32>
    %c0_73 = arith.constant 0 : index
    %c0_74 = arith.constant 0 : index
    %131 = vector.load %arg2[%c0_73, %c0_74] : memref<8x1xf32, #tpu.memory_space<vmem>>, vector<8x1xf32>
    %132 = vector.broadcast %131 : vector<8x1xf32> to vector<8x256xf32>
    %133 = arith.addf %130, %132 : vector<8x256xf32>
    %cst_75 = arith.constant 0.000000e+00 : f32
    %134 = vector.broadcast %cst_75 : f32 to vector<8x256xf32>
    %135 = arith.maximumf %133, %134 : vector<8x256xf32>
    %cst_76 = arith.constant 0.000000e+00 : f32
    %136 = vector.broadcast %cst_76 : f32 to vector<2x64xf32>
    %137 = vector.extract_strided_slice %67 {offsets = [0, 0], sizes = [1, 256], strides = [1, 1]} : vector<8x256xf32> to vector<1x256xf32>
    %138 = vector.extract_strided_slice %135 {offsets = [0, 0], sizes = [1, 256], strides = [1, 1]} : vector<8x256xf32> to vector<1x256xf32>
    %139 = tpu.concatenate %137, %138 in 0 : vector<1x256xf32>, vector<1x256xf32> -> vector<2x256xf32>
    %c0_77 = arith.constant 0 : index
    %c0_78 = arith.constant 0 : index
    %c0_79 = arith.constant 0 : index
    %140 = vector.load %arg3[%c0_77, %c0_78, %c0_79] : memref<8x256x64xf32, #tpu.memory_space<vmem>>, vector<1x256x64xf32>
    %141 = vector.shape_cast %140 : vector<1x256x64xf32> to vector<256x64xf32>
    %cst_80 = arith.constant dense<0.000000e+00> : vector<2x64xf32>
    %142 = tpu.matmul %139, %141, %cst_80 {dimension_numbers = #tpu.dot_dimension_numbers<[1], [0], [0], [1], [0, 0, 1, 1], [], []>} : vector<2x256xf32>, vector<256x64xf32>, vector<2x64xf32> -> vector<2x64xf32>
    %143 = arith.addf %136, %142 : vector<2x64xf32>
    %144 = vector.extract_strided_slice %67 {offsets = [1, 0], sizes = [1, 256], strides = [1, 1]} : vector<8x256xf32> to vector<1x256xf32>
    %145 = vector.extract_strided_slice %135 {offsets = [1, 0], sizes = [1, 256], strides = [1, 1]} : vector<8x256xf32> to vector<1x256xf32>
    %146 = tpu.concatenate %144, %145 in 0 : vector<1x256xf32>, vector<1x256xf32> -> vector<2x256xf32>
    %c1_81 = arith.constant 1 : index
    %c0_82 = arith.constant 0 : index
    %c0_83 = arith.constant 0 : index
    %147 = vector.load %arg3[%c1_81, %c0_82, %c0_83] : memref<8x256x64xf32, #tpu.memory_space<vmem>>, vector<1x256x64xf32>
    %148 = vector.shape_cast %147 : vector<1x256x64xf32> to vector<256x64xf32>
    %cst_84 = arith.constant dense<0.000000e+00> : vector<2x64xf32>
    %149 = tpu.matmul %146, %148, %cst_84 {dimension_numbers = #tpu.dot_dimension_numbers<[1], [0], [0], [1], [0, 0, 1, 1], [], []>} : vector<2x256xf32>, vector<256x64xf32>, vector<2x64xf32> -> vector<2x64xf32>
    %150 = arith.addf %143, %149 : vector<2x64xf32>
    %151 = vector.extract_strided_slice %67 {offsets = [2, 0], sizes = [1, 256], strides = [1, 1]} : vector<8x256xf32> to vector<1x256xf32>
    %152 = vector.extract_strided_slice %135 {offsets = [2, 0], sizes = [1, 256], strides = [1, 1]} : vector<8x256xf32> to vector<1x256xf32>
    %153 = tpu.concatenate %151, %152 in 0 : vector<1x256xf32>, vector<1x256xf32> -> vector<2x256xf32>
    %c2_85 = arith.constant 2 : index
    %c0_86 = arith.constant 0 : index
    %c0_87 = arith.constant 0 : index
    %154 = vector.load %arg3[%c2_85, %c0_86, %c0_87] : memref<8x256x64xf32, #tpu.memory_space<vmem>>, vector<1x256x64xf32>
    %155 = vector.shape_cast %154 : vector<1x256x64xf32> to vector<256x64xf32>
    %cst_88 = arith.constant dense<0.000000e+00> : vector<2x64xf32>
    %156 = tpu.matmul %153, %155, %cst_88 {dimension_numbers = #tpu.dot_dimension_numbers<[1], [0], [0], [1], [0, 0, 1, 1], [], []>} : vector<2x256xf32>, vector<256x64xf32>, vector<2x64xf32> -> vector<2x64xf32>
    %157 = arith.addf %150, %156 : vector<2x64xf32>
    %158 = vector.extract_strided_slice %67 {offsets = [3, 0], sizes = [1, 256], strides = [1, 1]} : vector<8x256xf32> to vector<1x256xf32>
    %159 = vector.extract_strided_slice %135 {offsets = [3, 0], sizes = [1, 256], strides = [1, 1]} : vector<8x256xf32> to vector<1x256xf32>
    %160 = tpu.concatenate %158, %159 in 0 : vector<1x256xf32>, vector<1x256xf32> -> vector<2x256xf32>
    %c3_89 = arith.constant 3 : index
    %c0_90 = arith.constant 0 : index
    %c0_91 = arith.constant 0 : index
    %161 = vector.load %arg3[%c3_89, %c0_90, %c0_91] : memref<8x256x64xf32, #tpu.memory_space<vmem>>, vector<1x256x64xf32>
    %162 = vector.shape_cast %161 : vector<1x256x64xf32> to vector<256x64xf32>
    %cst_92 = arith.constant dense<0.000000e+00> : vector<2x64xf32>
    %163 = tpu.matmul %160, %162, %cst_92 {dimension_numbers = #tpu.dot_dimension_numbers<[1], [0], [0], [1], [0, 0, 1, 1], [], []>} : vector<2x256xf32>, vector<256x64xf32>, vector<2x64xf32> -> vector<2x64xf32>
    %164 = arith.addf %157, %163 : vector<2x64xf32>
    %165 = vector.extract_strided_slice %67 {offsets = [4, 0], sizes = [1, 256], strides = [1, 1]} : vector<8x256xf32> to vector<1x256xf32>
    %166 = vector.extract_strided_slice %135 {offsets = [4, 0], sizes = [1, 256], strides = [1, 1]} : vector<8x256xf32> to vector<1x256xf32>
    %167 = tpu.concatenate %165, %166 in 0 : vector<1x256xf32>, vector<1x256xf32> -> vector<2x256xf32>
    %c4_93 = arith.constant 4 : index
    %c0_94 = arith.constant 0 : index
    %c0_95 = arith.constant 0 : index
    %168 = vector.load %arg3[%c4_93, %c0_94, %c0_95] : memref<8x256x64xf32, #tpu.memory_space<vmem>>, vector<1x256x64xf32>
    %169 = vector.shape_cast %168 : vector<1x256x64xf32> to vector<256x64xf32>
    %cst_96 = arith.constant dense<0.000000e+00> : vector<2x64xf32>
    %170 = tpu.matmul %167, %169, %cst_96 {dimension_numbers = #tpu.dot_dimension_numbers<[1], [0], [0], [1], [0, 0, 1, 1], [], []>} : vector<2x256xf32>, vector<256x64xf32>, vector<2x64xf32> -> vector<2x64xf32>
    %171 = arith.addf %164, %170 : vector<2x64xf32>
    %172 = vector.extract_strided_slice %67 {offsets = [5, 0], sizes = [1, 256], strides = [1, 1]} : vector<8x256xf32> to vector<1x256xf32>
    %173 = vector.extract_strided_slice %135 {offsets = [5, 0], sizes = [1, 256], strides = [1, 1]} : vector<8x256xf32> to vector<1x256xf32>
    %174 = tpu.concatenate %172, %173 in 0 : vector<1x256xf32>, vector<1x256xf32> -> vector<2x256xf32>
    %c5_97 = arith.constant 5 : index
    %c0_98 = arith.constant 0 : index
    %c0_99 = arith.constant 0 : index
    %175 = vector.load %arg3[%c5_97, %c0_98, %c0_99] : memref<8x256x64xf32, #tpu.memory_space<vmem>>, vector<1x256x64xf32>
    %176 = vector.shape_cast %175 : vector<1x256x64xf32> to vector<256x64xf32>
    %cst_100 = arith.constant dense<0.000000e+00> : vector<2x64xf32>
    %177 = tpu.matmul %174, %176, %cst_100 {dimension_numbers = #tpu.dot_dimension_numbers<[1], [0], [0], [1], [0, 0, 1, 1], [], []>} : vector<2x256xf32>, vector<256x64xf32>, vector<2x64xf32> -> vector<2x64xf32>
    %178 = arith.addf %171, %177 : vector<2x64xf32>
    %179 = vector.extract_strided_slice %67 {offsets = [6, 0], sizes = [1, 256], strides = [1, 1]} : vector<8x256xf32> to vector<1x256xf32>
    %180 = vector.extract_strided_slice %135 {offsets = [6, 0], sizes = [1, 256], strides = [1, 1]} : vector<8x256xf32> to vector<1x256xf32>
    %181 = tpu.concatenate %179, %180 in 0 : vector<1x256xf32>, vector<1x256xf32> -> vector<2x256xf32>
    %c6_101 = arith.constant 6 : index
    %c0_102 = arith.constant 0 : index
    %c0_103 = arith.constant 0 : index
    %182 = vector.load %arg3[%c6_101, %c0_102, %c0_103] : memref<8x256x64xf32, #tpu.memory_space<vmem>>, vector<1x256x64xf32>
    %183 = vector.shape_cast %182 : vector<1x256x64xf32> to vector<256x64xf32>
    %cst_104 = arith.constant dense<0.000000e+00> : vector<2x64xf32>
    %184 = tpu.matmul %181, %183, %cst_104 {dimension_numbers = #tpu.dot_dimension_numbers<[1], [0], [0], [1], [0, 0, 1, 1], [], []>} : vector<2x256xf32>, vector<256x64xf32>, vector<2x64xf32> -> vector<2x64xf32>
    %185 = arith.addf %178, %184 : vector<2x64xf32>
    %186 = vector.extract_strided_slice %67 {offsets = [7, 0], sizes = [1, 256], strides = [1, 1]} : vector<8x256xf32> to vector<1x256xf32>
    %187 = vector.extract_strided_slice %135 {offsets = [7, 0], sizes = [1, 256], strides = [1, 1]} : vector<8x256xf32> to vector<1x256xf32>
    %188 = tpu.concatenate %186, %187 in 0 : vector<1x256xf32>, vector<1x256xf32> -> vector<2x256xf32>
    %c7_105 = arith.constant 7 : index
    %c0_106 = arith.constant 0 : index
    %c0_107 = arith.constant 0 : index
    %189 = vector.load %arg3[%c7_105, %c0_106, %c0_107] : memref<8x256x64xf32, #tpu.memory_space<vmem>>, vector<1x256x64xf32>
    %190 = vector.shape_cast %189 : vector<1x256x64xf32> to vector<256x64xf32>
    %cst_108 = arith.constant dense<0.000000e+00> : vector<2x64xf32>
    %191 = tpu.matmul %188, %190, %cst_108 {dimension_numbers = #tpu.dot_dimension_numbers<[1], [0], [0], [1], [0, 0, 1, 1], [], []>} : vector<2x256xf32>, vector<256x64xf32>, vector<2x64xf32> -> vector<2x64xf32>
    %192 = arith.addf %185, %191 : vector<2x64xf32>
    %c0_109 = arith.constant 0 : index
    %c0_110 = arith.constant 0 : index
    %193 = vector.load %arg4[%c0_109, %c0_110] : memref<1x64xf32, #tpu.memory_space<vmem>>, vector<1x64xf32>
    %194 = vector.broadcast %193 : vector<1x64xf32> to vector<2x64xf32>
    %195 = arith.addf %192, %194 : vector<2x64xf32>
    %cst_111 = arith.constant 0.000000e+00 : f32
    %196 = vector.broadcast %cst_111 : f32 to vector<2x64xf32>
    %197 = arith.maximumf %195, %196 : vector<2x64xf32>
    %c0_112 = arith.constant 0 : index
    %c0_113 = arith.constant 0 : index
    %198 = vector.load %arg5[%c0_112, %c0_113] : memref<64x7xf32, #tpu.memory_space<vmem>>, vector<64x7xf32>
    %cst_114 = arith.constant dense<0.000000e+00> : vector<2x7xf32>
    %199 = tpu.matmul %197, %198, %cst_114 {dimension_numbers = #tpu.dot_dimension_numbers<[1], [0], [0], [1], [0, 0, 1, 1], [], []>} : vector<2x64xf32>, vector<64x7xf32>, vector<2x7xf32> -> vector<2x7xf32>
    %c0_115 = arith.constant 0 : index
    %c0_116 = arith.constant 0 : index
    %200 = vector.load %arg6[%c0_115, %c0_116] : memref<1x7xf32, #tpu.memory_space<vmem>>, vector<1x7xf32>
    %201 = vector.broadcast %200 : vector<1x7xf32> to vector<2x7xf32>
    %202 = arith.addf %199, %201 : vector<2x7xf32>
    %203 = vector.extract_strided_slice %202 {offsets = [0, 0], sizes = [2, 6], strides = [1, 1]} : vector<2x7xf32> to vector<2x6xf32>
    %204 = vector.extract_strided_slice %202 {offsets = [0, 6], sizes = [2, 1], strides = [1, 1]} : vector<2x7xf32> to vector<2x1xf32>
    %cst_117 = arith.constant dense<0.000000e+00> : vector<2xf32>
    %205 = vector.multi_reduction <add>, %203, %cst_117 [1] : vector<2x6xf32> to vector<2xf32>
    %206 = vector.shape_cast %205 : vector<2xf32> to vector<2x1xf32>
    %cst_118 = arith.constant 6.000000e+00 : f32
    %207 = vector.broadcast %cst_118 : f32 to vector<2x1xf32>
    %208 = arith.divf %206, %207 : vector<2x1xf32>
    %209 = arith.subf %204, %208 : vector<2x1xf32>
    %210 = vector.broadcast %209 : vector<2x1xf32> to vector<2x6xf32>
    %211 = arith.addf %210, %203 : vector<2x6xf32>
    %c0_119 = arith.constant 0 : index
    %c0_120 = arith.constant 0 : index
    %212 = vector.load %arg7[%c0_119, %c0_120] : memref<2x6xf32, #tpu.memory_space<vmem>>, vector<2x6xf32>
    tpu.vector_store %arg7[%c0_119, %c0_120], %211 {strides = array<i32>} : memref<2x6xf32, #tpu.memory_space<vmem>>, vector<2x6xf32>,
    return
  }
}

</mosaic_0001>

<bundles_post_ra>
// kernel: dueling_network_forward.1
= control target key start
LH: loop header
LB: loop body
LE: loop exit
PB: predicated region body
PF: predicated region fallthrough
CT: control target
= control target key end

     0   :  { %s3596_s28 = smov 127   ;;  %v3597_v4 = vmov 0.0   ;;  %s4769_s0 = inlined_call_operand.vmem [shape: f32[2,4,256], index: 0, kind: input, shape index: {}]   ;;  %s4770_s1 = inlined_call_operand.vmem [shape: f32[9,8,4], index: 1, kind: input, shape index: {}]   ;;  %s4771_s2 = inlined_call_operand.vmem [shape: f32[8,1], index: 2, kind: input, shape index: {}]   ;;  %s4772_s3 = inlined_call_operand.vmem [shape: f32[8,256,64], index: 3, kind: input, shape index: {}]   ;;  %s4773_s4 = inlined_call_operand.vmem [shape: f32[1,64], index: 4, kind: input, shape index: {}]   ;;  %s4774_s5 = inlined_call_operand.vmem [shape: f32[64,7], index: 5, kind: input, shape index: {}]   ;;  %s4775_s6 = inlined_call_operand.vmem [shape: f32[1,7], index: 6, kind: input, shape index: {}]   ;;  %s4776_s7 = inlined_call_operand.hbm [shape: f32[2,6], index: 7, kind: output, shape index: {}]  }
   0x1   :  { %v3653_v0 = vld [vmem:[%s4769_s0 + $0x8] sm:$0xff]  ;;  %v3658_v1 = vld [vmem:[%s4769_s0] sm:$0xff]  ;;  %116 = vmatprep.mubr.f32.mxu1 %v3597_v4  ;;  %284 = vmatprep.mubr.f32.mxu0 %v3597_v4 }
   0x2   :  { %859 = vrot.lane.b32.xlu1 %v3653_v0, %s3596_s28  ;;  %31 = vrot.lane.b32.xlu0 %v3658_v1, %s3596_s28  ;;  %v3664_v2 = vcombine.high %v3653_v0, %v3653_v0  ;;  %v30_v3 = vcombine.high %v3658_v1, %v3658_v1 }
   0x3   :  { %12 = vsyncpa [#allocation3], 0  ;;  %s3598_s0 = smov 126   ;;  %s3599_s29 = smov 112   ;;  %v845_v5 = vld [vmem:[%s4771_s2] sm:$0xff]  ;;  %v3605_v6 = vmov 0  }
   0x4   :  { %s3600_s30 = smov 111   ;;  %s3601_s8 = smov 110   ;;  %3568 = vset.pattern.permute.xlu0 %v3605_v6  ;;  %vm35_vm0 = vcmask 1039360   ;;  %vm46_vm1 = vcmask 1043456   ;;  %v2656_v13 = vld [vmem:[%s4770_s1 + $0x8] sm:$0xff]  ;;  %vm42_vm2 = vcmask 31744  }
   0x5   :  { %s3602_s9 = smov 96   ;;  %s3603_s10 = smov 95   ;;  %vm205_vm3 = vcmask 1031168   ;;  %v2663_v19 = vld [vmem:[%s4770_s1 + $0x10] sm:$0xff]  ;;  %v28_v22 = vld [vmem:[%s4770_s1] sm:$0xff]  ;;  %vm297_vm4 = vcmask 916480  }
   0x6   :  { %861 = vrot.lane.b32.xlu1 %v3664_v2, %s3596_s28  ;;  %33 = vrot.lane.b32.xlu0 %v30_v3, %s3596_s28  ;;  %s3604_s11 = smov 94   ;;  %v2667_v28 = vld [vmem:[%s4770_s1 + $0x18] sm:$0xff]  ;;  %vm389_vm5 = vcmask 908288   ;;  %v2671_v36 = vld [vmem:[%s4770_s1 + $0x20] sm:$0xff]  ;;  %vm481_vm6 = vcmask 900096   ;;  %vm573_vm7 = vcmask 785408  }
   0x7   :  { %v2675_v45 = vld [vmem:[%s4770_s1 + $0x28] sm:$0xff]  ;;  %v2679_v54 = vld [vmem:[%s4770_s1 + $0x30] sm:$0xff]  ;;  %vm665_vm8 = vcmask 777216   ;;  %v2683_v63 = vld [vmem:[%s4770_s1 + $0x38] sm:$0xff]  ;;  %vm757_vm9 = vcmask 769024   ;;  %vm1630_vm10 = vcmask 1040384  }
   0x8   :  { %vm3607_vm11 = vmmov 0   ;;  %vm2554_vm12 = vcmask 523264   ;;  %vm2628_vm13 = vcmask 41984  }
   0xa   :  { %203 = vrot.lane.b32.xlu1 %v30_v3, %s3598_s0  ;;  %201 = vrot.lane.b32.xlu0 %v3658_v1, %s3598_s0 }
   0xe   :  { %1020 = vrot.lane.b32.xlu1 %v3664_v2, %s3598_s0  ;;  %1018 = vrot.lane.b32.xlu0 %v3653_v0, %s3598_s0 }
  0x12   :  { %295 = vrot.lane.b32.xlu1 %v30_v3, %s3599_s29  ;;  %293 = vrot.lane.b32.xlu0 %v3658_v1, %s3599_s29 }
  0x16   :  { %1106 = vrot.lane.b32.xlu1 %v3664_v2, %s3599_s29  ;;  %1104 = vrot.lane.b32.xlu0 %v3653_v0, %s3599_s29 }
  0x1a   :  { %387 = vrot.lane.b32.xlu1 %v30_v3, %s3600_s30  ;;  %385 = vrot.lane.b32.xlu0 %v3658_v1, %s3600_s30 }
  0x1e   :  { %1192 = vrot.lane.b32.xlu1 %v3664_v2, %s3600_s30  ;;  %1190 = vrot.lane.b32.xlu0 %v3653_v0, %s3600_s30 }
  0x22   :  { %479 = vrot.lane.b32.xlu1 %v30_v3, %s3601_s8  ;;  %477 = vrot.lane.b32.xlu0 %v3658_v1, %s3601_s8 }
  0x26   :  { %1278 = vrot.lane.b32.xlu1 %v3664_v2, %s3601_s8  ;;  %1276 = vrot.lane.b32.xlu0 %v3653_v0, %s3601_s8 }
  0x2a   :  { %571 = vrot.lane.b32.xlu1 %v30_v3, %s3602_s9  ;;  %569 = vrot.lane.b32.xlu0 %v3658_v1, %s3602_s9 }
  0x2e   :  { %1364 = vrot.lane.b32.xlu1 %v3664_v2, %s3602_s9  ;;  %1362 = vrot.lane.b32.xlu0 %v3653_v0, %s3602_s9 }
  0x32   :  { %663 = vrot.lane.b32.xlu1 %v30_v3, %s3603_s10  ;;  %661 = vrot.lane.b32.xlu0 %v3658_v1, %s3603_s10 }
  0x36   :  { %1450 = vrot.lane.b32.xlu1 %v3664_v2, %s3603_s10  ;;  %1448 = vrot.lane.b32.xlu0 %v3653_v0, %s3603_s10 }
  0x3a   :  { %755 = vrot.lane.b32.xlu1 %v30_v3, %s3604_s11  ;;  %753 = vrot.lane.b32.xlu0 %v3658_v1, %s3604_s11 }
  0x3e   :  { %1536 = vrot.lane.b32.xlu1 %v3664_v2, %s3604_s11  ;;  %1534 = vrot.lane.b32.xlu0 %v3653_v0, %s3604_s11 }
  0x42   :  { %848 = vperm.xlu0 %3568, %v845_v5  }
  0x74   :  { %v860_v7 = vpop.permute.xlu1 %859  ;;  %v32_v8 = vpop.permute.xlu0 %31 }
  0x78   :  { %v862_v9 = vpop.permute.xlu1 %861  ;;  %v34_v10 = vpop.permute.xlu0 %33 }
  0x79   :  { %v39_v11 = vsel %vm35_vm0, %v34_v10, %v32_v8  ;;  %v36_v12 = vsel %vm35_vm0, %v32_v8, %v34_v10  ;;  %v866_v14 = vsel %vm35_vm0, %v862_v9, %v860_v7  ;;  %v863_v23 = vsel %vm35_vm0, %v860_v7, %v862_v9  ;;  %v2687_v9 = vld [vmem:[%s4770_s1 + $0x40] sm:$0xff] }
  0x7a   :  { %2657 = vmatprep.subr.msk.mxu1 %vm46_vm1, %v39_v11 }
  0x7b   :  { %2658 = vmatpush1.msk.msra.mxu1 %vm46_vm1, %v36_v12 }
  0x7c   :  { %v204_v15 = vpop.permute.xlu1 %203  ;;  %2659 = vmatmul.mubr.msk.f32.vlgmr.msra.gmra.mrb[0].mxu1 %vm42_vm2, %v2656_v13  ;;  %2660 = vmatprep.subr.msk.mxu1 %vm46_vm1, %v30_v3  ;;  %v202_v16 = vpop.permute.xlu0 %201 }
  0x7d   :  { %2661 = vmatpush1.msk.msra.mxu1 %vm46_vm1, %v3658_v1  ;;  %v209_v17 = vsel %vm205_vm3, %v204_v15, %v202_v16  ;;  %v206_v18 = vsel %vm205_vm3, %v202_v16, %v204_v15  ;;  %194 = vmatprep.mubr.f32.mxu1 %v3597_v4 }
  0x7e   :  { %2664 = vmatprep.subr.msk.mxu0 %vm46_vm1, %v209_v17  ;;  %2692 = vmatprep.subr.msk.mxu1 %vm46_vm1, %v866_v14  ;;  %v2735_v17 = vld [vmem:[%s4772_s3 + $0x180] sm:$0xff] }
  0x7f   :  { %2665 = vmatpush1.msk.msra.mxu0 %vm46_vm1, %v206_v18  ;;  %v2736_v18 = vld [vmem:[%s4772_s3 + $0x188] sm:$0xff] }
  0x80   :  { %v1021_v20 = vpop.permute.xlu1 %1020  ;;  %2666 = vmatmul.mubr.msk.f32.vlgmr.msra.gmra.mrb[0].mxu0 %vm42_vm2, %v2663_v19  ;;  %v1019_v21 = vpop.permute.xlu0 %1018 }
  0x81   :  { %376 = vmatprep.mubr.f32.mxu0 %v3597_v4  ;;  %v1025_v29 = vsel %vm205_vm3, %v1021_v20, %v1019_v21  ;;  %v1022_v37 = vsel %vm205_vm3, %v1019_v21, %v1021_v20  ;;  %v2719_v20 = vld [vmem:[%s4772_s3 + $0x100] sm:$0xff]  ;;  %v2720_v21 = vld [vmem:[%s4772_s3 + $0x108] sm:$0xff] }
  0x84   :  { %v296_v24 = vpop.permute.xlu1 %295  ;;  %2662 = vmatmul.mubr.msk.f32.vlgmr.msra.gmra.mrb[0].mxu1 %vm42_vm2, %v28_v22  ;;  %v294_v25 = vpop.permute.xlu0 %293 }
  0x85   :  { %2693 = vmatpush1.msk.msra.mxu1 %vm46_vm1, %v863_v23  ;;  %v298_v26 = vsel %vm297_vm4, %v294_v25, %v296_v24  ;;  %v301_v27 = vsel %vm297_vm4, %v296_v24, %v294_v25  ;;  %936 = vmatprep.mubr.f32.mxu1 %v3597_v4  ;;  %v1649_v23 = vld [vmem:[%s4772_s3 + $0x80] sm:$0xff]  ;;  %v1650_v24 = vld [vmem:[%s4772_s3 + $0x88] sm:$0xff] }
  0x86   :  { %2668 = vmatprep.subr.msk.mxu0 %vm46_vm1, %v301_v27  ;;  %2695 = vmatprep.subr.msk.mxu1 %vm46_vm1, %v3664_v2  ;;  %v3286_v25 = vpack.c.bf16 %v1650_v24, %v1649_v23  ;;  %v1634_v27 = vld [vmem:[%s4772_s3 + $0x8] sm:$0xff]  ;;  %v1644_v23 = vld [vmem:[%s4772_s3 + $0x58] sm:$0xff]  ;;  %v2747_v24 = vld [vmem:[%s4772_s3 + $0x1e0] sm:$0xff] }
  0x87   :  { %2669 = vmatpush1.msk.msra.mxu0 %vm46_vm1, %v298_v26  ;;  %v1633_v26 = vld [vmem:[%s4772_s3] sm:$0xff] }
  0x88   :  { %v1107_v30 = vpop.permute.xlu1 %1106  ;;  %2670 = vmatmul.mubr.msk.f32.vlgmr.msra.gmra.mrb[0].mxu0 %vm42_vm2, %v2667_v28  ;;  %2694 = vmatmul.mubr.msk.f32.vlgmr.msra.gmra.mrb[2].mxu1 %vm42_vm2, %v2656_v13  ;;  %v1105_v31 = vpop.permute.xlu0 %1104 }
  0x89   :  { %2696 = vmatpush1.msk.msra.mxu1 %vm46_vm1, %v3653_v0  ;;  %468 = vmatprep.mubr.f32.mxu0 %v3597_v4  ;;  %v1111_v38 = vsel %vm297_vm4, %v1107_v30, %v1105_v31  ;;  %v1108_v46 = vsel %vm297_vm4, %v1105_v31, %v1107_v30  ;;  %v2738_v30 = vld [vmem:[%s4772_s3 + $0x198] sm:$0xff] }
  0x8a   :  { %1011 = vmatprep.mubr.f32.mxu1 %v3597_v4  ;;  %2698 = vmatprep.subr.msk.mxu1 %vm46_vm1, %v1025_v29  ;;  %v2737_v29 = vld [vmem:[%s4772_s3 + $0x190] sm:$0xff] }
  0x8b   :  { %v3258_v31 = vpack.c.bf16 %v2738_v30, %v2737_v29  ;;  %v2731_v29 = vld [vmem:[%s4772_s3 + $0x160] sm:$0xff]  ;;  %v2732_v30 = vld [vmem:[%s4772_s3 + $0x168] sm:$0xff] }
  0x8c   :  { %v388_v32 = vpop.permute.xlu1 %387  ;;  %v386_v33 = vpop.permute.xlu0 %385 }
  0x8d   :  { %v390_v34 = vsel %vm389_vm5, %v386_v33, %v388_v32  ;;  %v393_v35 = vsel %vm389_vm5, %v388_v32, %v386_v33  ;;  %v2721_v32 = vld [vmem:[%s4772_s3 + $0x110] sm:$0xff]  ;;  %v2722_v33 = vld [vmem:[%s4772_s3 + $0x118] sm:$0xff] }
  0x8e   :  { %2672 = vmatprep.subr.msk.mxu0 %vm46_vm1, %v393_v35  ;;  %v1651_v35 = vld [vmem:[%s4772_s3 + $0x90] sm:$0xff] }
  0x8f   :  { %2673 = vmatpush1.msk.msra.mxu0 %vm46_vm1, %v390_v34  ;;  %v3260_v34 = vpack.c.bf16 %v2722_v33, %v2721_v32  ;;  %v1661_v32 = vld [vmem:[%s4772_s3 + $0xe0] sm:$0xff]  ;;  %v1662_v33 = vld [vmem:[%s4772_s3 + $0xe8] sm:$0xff] }
  0x90   :  { %v1193_v39 = vpop.permute.xlu1 %1192  ;;  %2674 = vmatmul.mubr.msk.f32.vlgmr.msra.gmra.mrb[0].mxu0 %vm42_vm2, %v2671_v36  ;;  %2697 = vmatmul.mubr.msk.f32.vlgmr.msra.gmra.mrb[2].mxu1 %vm42_vm2, %v28_v22  ;;  %v1191_v40 = vpop.permute.xlu0 %1190  ;;  %v3256_v22 = vpack.c.bf16 %v2720_v21, %v2719_v20  ;;  %v1660_v20 = vld [vmem:[%s4772_s3 + $0xd8] sm:$0xff]  ;;  %v1643_v21 = vld [vmem:[%s4772_s3 + $0x50] sm:$0xff] }
  0x91   :  { %2699 = vmatpush1.msk.msra.mxu1 %vm46_vm1, %v1022_v37  ;;  %560 = vmatprep.mubr.f32.mxu0 %v3597_v4  ;;  %v1197_v47 = vsel %vm389_vm5, %v1193_v39, %v1191_v40  ;;  %v1194_v55 = vsel %vm389_vm5, %v1191_v40, %v1193_v39  ;;  %v1636_v39 = vld [vmem:[%s4772_s3 + $0x18] sm:$0xff] }
  0x92   :  { %1095 = vmatprep.mubr.f32.mxu1 %v3597_v4  ;;  %2701 = vmatprep.subr.msk.mxu1 %vm46_vm1, %v1111_v38  ;;  %v1635_v38 = vld [vmem:[%s4772_s3 + $0x10] sm:$0xff] }
  0x93   :  { %v3292_v40 = vpack.c.bf16 %v1636_v39, %v1635_v38  ;;  %v2749_v38 = vld [vmem:[%s4772_s3 + $0x1f0] sm:$0xff]  ;;  %v2750_v39 = vld [vmem:[%s4772_s3 + $0x1f8] sm:$0xff] }
  0x94   :  { %v480_v41 = vpop.permute.xlu1 %479  ;;  %v478_v42 = vpop.permute.xlu0 %477 }
  0x95   :  { %v482_v43 = vsel %vm481_vm6, %v478_v42, %v480_v41  ;;  %v485_v44 = vsel %vm481_vm6, %v480_v41, %v478_v42  ;;  %v2739_v41 = vld [vmem:[%s4772_s3 + $0x1a0] sm:$0xff]  ;;  %v2740_v42 = vld [vmem:[%s4772_s3 + $0x1a8] sm:$0xff] }
  0x96   :  { %2676 = vmatprep.subr.msk.mxu0 %vm46_vm1, %v485_v44  ;;  %v2723_v44 = vld [vmem:[%s4772_s3 + $0x120] sm:$0xff] }
  0x97   :  { %2677 = vmatpush1.msk.msra.mxu0 %vm46_vm1, %v482_v43  ;;  %v3262_v43 = vpack.c.bf16 %v2740_v42, %v2739_v41  ;;  %v2733_v41 = vld [vmem:[%s4772_s3 + $0x170] sm:$0xff]  ;;  %v2734_v42 = vld [vmem:[%s4772_s3 + $0x178] sm:$0xff] }
  0x98   :  { %v1279_v48 = vpop.permute.xlu1 %1278  ;;  %2678 = vmatmul.mubr.msk.f32.vlgmr.msra.gmra.mrb[0].mxu0 %vm42_vm2, %v2675_v45  ;;  %2700 = vmatmul.mubr.msk.f32.vlgmr.msra.gmra.mrb[2].mxu1 %vm42_vm2, %v2663_v19  ;;  %v1277_v49 = vpop.permute.xlu0 %1276  ;;  %v3254_v19 = vpack.c.bf16 %v2736_v18, %v2735_v17  ;;  %v2730_v17 = vld [vmem:[%s4772_s3 + $0x158] sm:$0xff]  ;;  %v1659_v18 = vld [vmem:[%s4772_s3 + $0xd0] sm:$0xff] }
  0x99   :  { %2702 = vmatpush1.msk.msra.mxu1 %vm46_vm1, %v1108_v46  ;;  %652 = vmatprep.mubr.f32.mxu0 %v3597_v4  ;;  %v1283_v56 = vsel %vm481_vm6, %v1279_v48, %v1277_v49  ;;  %v1280_v0 = vsel %vm481_vm6, %v1277_v49, %v1279_v48  ;;  %v1653_v46 = vld [vmem:[%s4772_s3 + $0xa0] sm:$0xff]  ;;  %v1654_v48 = vld [vmem:[%s4772_s3 + $0xa8] sm:$0xff] }
  0x9a   :  { %1181 = vmatprep.mubr.f32.mxu1 %v3597_v4  ;;  %2704 = vmatprep.subr.msk.mxu1 %vm46_vm1, %v1197_v47  ;;  %v1637_v49 = vld [vmem:[%s4772_s3 + $0x20] sm:$0xff] }
  0x9c   :  { %v572_v50 = vpop.permute.xlu1 %571  ;;  %v570_v51 = vpop.permute.xlu0 %569 }
  0x9d   :  { %v574_v52 = vsel %vm573_vm7, %v570_v51, %v572_v50  ;;  %v577_v53 = vsel %vm573_vm7, %v572_v50, %v570_v51  ;;  %v1638_v50 = vld [vmem:[%s4772_s3 + $0x28] sm:$0xff]  ;;  %v3294_v51 = vpack.c.bf16 %v1654_v48, %v1653_v46  ;;  %v1648_v48 = vld [vmem:[%s4772_s3 + $0x78] sm:$0xff] }
  0x9e   :  { %2680 = vmatprep.subr.msk.mxu0 %vm46_vm1, %v577_v53  ;;  %v2741_v53 = vld [vmem:[%s4772_s3 + $0x1b0] sm:$0xff] }
  0x9f   :  { %2681 = vmatpush1.msk.msra.mxu0 %vm46_vm1, %v574_v52  ;;  %v3296_v52 = vpack.c.bf16 %v1638_v50, %v1637_v49  ;;  %v2767_v50 = vld [vmem:[%s4772_s3 + $0x280] sm:$0xff] }
  0xa0   :  { %v1365_v57 = vpop.permute.xlu1 %1364  ;;  %2682 = vmatmul.mubr.msk.f32.vlgmr.msra.gmra.mrb[0].mxu0 %vm42_vm2, %v2679_v54  ;;  %2703 = vmatmul.mubr.msk.f32.vlgmr.msra.gmra.mrb[2].mxu1 %vm42_vm2, %v2667_v28  ;;  %v1363_v58 = vpop.permute.xlu0 %1362  ;;  %v3288_v28 = vpack.c.bf16 %v1634_v27, %v1633_v26 }
  0xa1   :  { %2705 = vmatpush1.msk.msra.mxu1 %vm46_vm1, %v1194_v55  ;;  %744 = vmatprep.mubr.f32.mxu0 %v3597_v4  ;;  %v1369_v1 = vsel %vm573_vm7, %v1365_v57, %v1363_v58  ;;  %v1366_v10 = vsel %vm573_vm7, %v1363_v58, %v1365_v57  ;;  %v2725_v55 = vld [vmem:[%s4772_s3 + $0x130] sm:$0xff]  ;;  %v2726_v57 = vld [vmem:[%s4772_s3 + $0x138] sm:$0xff] }
  0xa2   :  { %1267 = vmatprep.mubr.f32.mxu1 %v3597_v4  ;;  %2707 = vmatprep.subr.msk.mxu1 %vm46_vm1, %v1283_v56  ;;  %v1655_v58 = vld [vmem:[%s4772_s3 + $0xb0] sm:$0xff] }
  0xa4   :  { %v664_v59 = vpop.permute.xlu1 %663  ;;  %v662_v60 = vpop.permute.xlu0 %661 }
  0xa5   :  { %v666_v61 = vsel %vm665_vm8, %v662_v60, %v664_v59  ;;  %v669_v62 = vsel %vm665_vm8, %v664_v59, %v662_v60  ;;  %v1656_v59 = vld [vmem:[%s4772_s3 + $0xb8] sm:$0xff]  ;;  %v3268_v60 = vpack.c.bf16 %v2726_v57, %v2725_v55 }
  0xa6   :  { %2684 = vmatprep.subr.msk.mxu0 %vm46_vm1, %v669_v62  ;;  %v1639_v62 = vld [vmem:[%s4772_s3 + $0x30] sm:$0xff] }
  0xa7   :  { %2685 = vmatpush1.msk.msra.mxu0 %vm46_vm1, %v666_v61  ;;  %v3298_v61 = vpack.c.bf16 %v1656_v59, %v1655_v58 }
  0xa8   :  { %v1451_v2 = vpop.permute.xlu1 %1450  ;;  %2686 = vmatmul.mubr.msk.f32.vlgmr.msra.gmra.mrb[0].mxu0 %vm42_vm2, %v2683_v63  ;;  %2706 = vmatmul.mubr.msk.f32.vlgmr.msra.gmra.mrb[2].mxu1 %vm42_vm2, %v2671_v36  ;;  %v1449_v3 = vpop.permute.xlu0 %1448  ;;  %v1652_v36 = vld [vmem:[%s4772_s3 + $0x98] sm:$0xff] }
  0xa9   :  { %2708 = vmatpush1.msk.msra.mxu1 %vm46_vm1, %v1280_v0  ;;  %836 = vmatprep.mubr.f32.mxu0 %v3597_v4  ;;  %v1455_v11 = vsel %vm665_vm8, %v1451_v2, %v1449_v3  ;;  %v1452_v14 = vsel %vm665_vm8, %v1449_v3, %v1451_v2  ;;  %v3290_v37 = vpack.c.bf16 %v1652_v36, %v1651_v35  ;;  %v2743_v0 = vld [vmem:[%s4772_s3 + $0x1c0] sm:$0xff]  ;;  %v2744_v2 = vld [vmem:[%s4772_s3 + $0x1c8] sm:$0xff] }
  0xaa   :  { %1353 = vmatprep.mubr.f32.mxu1 %v3597_v4  ;;  %2710 = vmatprep.subr.msk.mxu1 %vm46_vm1, %v1369_v1  ;;  %v2727_v3 = vld [vmem:[%s4772_s3 + $0x140] sm:$0xff]  ;;  %v1646_v36 = vld [vmem:[%s4772_s3 + $0x68] sm:$0xff] }
  0xab   :  { %v1645_v35 = vld [vmem:[%s4772_s3 + $0x60] sm:$0xff] }
  0xac   :  { %v756_v5 = vpop.permute.xlu1 %755  ;;  %v754_v6 = vpop.permute.xlu0 %753 }
  0xad   :  { %v758_v7 = vsel %vm757_vm9, %v754_v6, %v756_v5  ;;  %v761_v8 = vsel %vm757_vm9, %v756_v5, %v754_v6  ;;  %v2728_v5 = vld [vmem:[%s4772_s3 + $0x148] sm:$0xff]  ;;  %v3270_v6 = vpack.c.bf16 %v2744_v2, %v2743_v0 }
  0xae   :  { %2688 = vmatprep.subr.msk.mxu0 %vm46_vm1, %v761_v8  ;;  %v1658_v8 = vld [vmem:[%s4772_s3 + $0xc8] sm:$0xff] }
  0xaf   :  { %2689 = vmatpush1.msk.msra.mxu0 %vm46_vm1, %v758_v7  ;;  %v1657_v7 = vld [vmem:[%s4772_s3 + $0xc0] sm:$0xff]  ;;  %v4039_v2 = vld [vmem:[%s4772_s3 + $0x208] sm:$0xff] }
  0xb0   :  { %2690 = vmatmul.mubr.msk.f32.vlgmr.msra.gmra.mrb[0].mxu0 %vm42_vm2, %v2687_v9  ;;  %2709 = vmatmul.mubr.msk.f32.vlgmr.msra.gmra.mrb[2].mxu1 %vm42_vm2, %v2675_v45  ;;  %v1537_v12 = vpop.permute.xlu1 %1536  ;;  %v1535_v13 = vpop.permute.xlu0 %1534  ;;  %v2724_v45 = vld [vmem:[%s4772_s3 + $0x128] sm:$0xff] }
  0xb1   :  { %2711 = vmatpush1.msk.msra.mxu1 %vm46_vm1, %v1366_v10  ;;  %1439 = vmatprep.mubr.f32.mxu1 %v3597_v4  ;;  %v1541_v15 = vsel %vm757_vm9, %v1537_v12, %v1535_v13  ;;  %v1538_v16 = vsel %vm757_vm9, %v1535_v13, %v1537_v12  ;;  %v3264_v47 = vpack.c.bf16 %v2724_v45, %v2723_v44  ;;  %v1642_v12 = vld [vmem:[%s4772_s3 + $0x48] sm:$0xff]  ;;  %v2745_v13 = vld [vmem:[%s4772_s3 + $0x1d0] sm:$0xff]  ;;  %v1664_v45 = vld [vmem:[%s4772_s3 + $0xf8] sm:$0xff] }
  0xb2   :  { %2713 = vmatprep.subr.msk.mxu1 %vm46_vm1, %v1455_v11  ;;  %3255 = vmatprep.subr.bf16.mxu0 %v3254_v19  ;;  %v3272_v10 = vpack.c.bf16 %v2728_v5, %v2727_v3  ;;  %v3302_v11 = vpack.c.bf16 %v1658_v8, %v1657_v7  ;;  %v1663_v44 = vld [vmem:[%s4772_s3 + $0xf0] sm:$0xff]  ;;  %v4044_v3 = vld [vmem:[%s4772_s3 + $0x300] sm:$0xff]  ;;  %v4049_v5 = vld [vmem:[%s4772_s3 + $0x308] sm:$0xff] }
  0xb3   :  { %3257 = vmatpush3.bf16.msra.mxu0 %v3256_v22  ;;  %v3306_v22 = vpack.c.bf16 %v1660_v20, %v1659_v18  ;;  %v3314_v46 = vpack.c.bf16 %v1664_v45, %v1663_v44  ;;  %v4059_v7 = vld [vmem:[%s4772_s3 + $0x298] sm:$0xff]  ;;  %v4064_v8 = vld [vmem:[%s4772_s3 + $0x210] sm:$0xff]  ;;  %v4108_v18 = vld [vmem:[%s4772_s3 + $0x3a0] sm:$0xff] }
  0xb4   :  { %3259 = vmatprep.subr.bf16.mxu0 %v3258_v31  ;;  %v3280_v31 = vpack.c.bf16 %v2732_v30, %v2731_v29 }
  0xb7   :  { %3261 = vmatpush3.bf16.msra.mxu0 %v3260_v34  ;;  %v3310_v34 = vpack.c.bf16 %v1662_v33, %v1661_v32 }
  0xb8   :  { %2712 = vmatmul.mubr.msk.f32.vlgmr.msra.gmra.mrb[2].mxu1 %vm42_vm2, %v2679_v54  ;;  %3263 = vmatprep.subr.bf16.mxu0 %v3262_v43  ;;  %v2742_v54 = vld [vmem:[%s4772_s3 + $0x1b8] sm:$0xff]  ;;  %v3284_v43 = vpack.c.bf16 %v2734_v42, %v2733_v41 }
  0xb9   :  { %2714 = vmatpush1.msk.msra.mxu1 %vm46_vm1, %v1452_v14  ;;  %1525 = vmatprep.mubr.f32.mxu1 %v3597_v4  ;;  %v3266_v56 = vpack.c.bf16 %v2742_v54, %v2741_v53  ;;  %v2746_v14 = vld [vmem:[%s4772_s3 + $0x1d8] sm:$0xff]  ;;  %v2799_v53 = vld [vmem:[%s4772_s3 + $0x380] sm:$0xff]  ;;  %v2800_v54 = vld [vmem:[%s4772_s3 + $0x388] sm:$0xff] }
  0xba   :  { %2716 = vmatprep.subr.msk.mxu1 %vm46_vm1, %v1541_v15  ;;  %v3274_v15 = vpack.c.bf16 %v2746_v14, %v2745_v13  ;;  %v3350_v55 = vpack.c.bf16 %v2800_v54, %v2799_v53  ;;  %v4086_v13 = vld [vmem:[%s4772_s3 + $0x310] sm:$0xff]  ;;  %v4091_v14 = vld [vmem:[%s4772_s3 + $0x318] sm:$0xff] }
  0xbb   :  { %3265 = vmatpush3.bf16.msra.mxu0 %v3264_v47  ;;  %v1647_v47 = vld [vmem:[%s4772_s3 + $0x70] sm:$0xff] }
  0xbc   :  { %3267 = vmatprep.subr.bf16.mxu0 %v3266_v56  ;;  %v3316_v49 = vpack.c.bf16 %v1648_v48, %v1647_v47 }
  0xbf   :  { %3269 = vmatpush3.bf16.msra.mxu0 %v3268_v60 }
  0xc0   :  { %2715 = vmatmul.mubr.msk.f32.vlgmr.msra.gmra.mrb[2].mxu1 %vm42_vm2, %v2683_v63  ;;  %v1640_v63 = vld [vmem:[%s4772_s3 + $0x38] sm:$0xff]  ;;  %3271 = vmatprep.subr.bf16.mxu0 %v3270_v6  ;;  %v4054_v6 = vld [vmem:[%s4772_s3 + $0x290] sm:$0xff] }
  0xc1   :  { %2717 = vmatpush1.msk.msra.mxu1 %vm46_vm1, %v1538_v16  ;;  %1611 = vmatprep.mubr.f32.mxu1 %v3597_v4  ;;  %v3300_v1 = vpack.c.bf16 %v1640_v63, %v1639_v62  ;;  %v2729_v16 = vld [vmem:[%s4772_s3 + $0x150] sm:$0xff]  ;;  %v849_v62 = vpop.permute.xlu0 %848 }
  0xc2   :  { %3287 = vmatprep.subr.bf16.mxu1 %v3286_v25  ;;  %v2748_v25 = vld [vmem:[%s4772_s3 + $0x1e8] sm:$0xff]  ;;  %v3276_v26 = vpack.c.bf16 %v2730_v17, %v2729_v16 }
  0xc3   :  { %3273 = vmatpush3.bf16.msra.mxu0 %v3272_v10  ;;  %v3278_v27 = vpack.c.bf16 %v2748_v25, %v2747_v24  ;;  %v4074_v10 = vld [vmem:[%s4772_s3 + $0x390] sm:$0xff]  ;;  %v4103_v17 = vld [vmem:[%s4772_s3 + $0x2a8] sm:$0xff]  ;;  %v3356_v25 = vpack.c.bf16 %v4091_v14, %v4086_v13  ;;  %v2790_v13 = vld [vmem:[%s4772_s3 + $0x338] sm:$0xff] }
  0xc4   :  { %3275 = vmatprep.subr.bf16.mxu0 %v3274_v15  ;;  %v4096_v15 = vld [vmem:[%s4772_s3 + $0x2a0] sm:$0xff] }
  0xc7   :  { %3277 = vmatpush3.bf16.msra.mxu0 %v3276_v26 }
  0xc8   :  { %2718 = vmatmul.mubr.msk.f32.vlgmr.msra.gmra.mrb[2].mxu1 %vm42_vm2, %v2687_v9  ;;  %v1641_v9 = vld [vmem:[%s4772_s3 + $0x40] sm:$0xff]  ;;  %3279 = vmatprep.subr.bf16.mxu0 %v3278_v27 }
  0xc9   :  { %3289 = vmatpush3.bf16.msra.mxu1 %v3288_v28  ;;  %v3304_v19 = vpack.c.bf16 %v1642_v12, %v1641_v9  ;;  %v3308_v28 = vpack.c.bf16 %v1644_v23, %v1643_v21  ;;  %v4069_v9 = vld [vmem:[%s4772_s3 + $0x218] sm:$0xff]  ;;  %v3352_v21 = vpack.c.bf16 %v4049_v5, %v4044_v3  ;;  %v2755_v5 = vld [vmem:[%s4772_s3 + $0x220] sm:$0xff] }
  0xca   :  { %3291 = vmatprep.subr.bf16.mxu1 %v3290_v37  ;;  %v3312_v37 = vpack.c.bf16 %v1646_v36, %v1645_v35  ;;  %v3324_v23 = vpack.c.bf16 %v4069_v9, %v4064_v8  ;;  %v2758_v8 = vld [vmem:[%s4772_s3 + $0x238] sm:$0xff] }
  0xcb   :  { %3281 = vmatpush3.bf16.msra.mxu0 %v3280_v31 }
  0xcd   :  { %3293 = vmatpush3.bf16.msra.mxu1 %v3292_v40  ;;  %v3282_v40 = vpack.c.bf16 %v2750_v39, %v2749_v38 }
  0xce   :  { %3295 = vmatprep.subr.bf16.mxu1 %v3294_v51  ;;  %v2768_v51 = vld [vmem:[%s4772_s3 + $0x288] sm:$0xff] }
  0xcf   :  { %3283 = vmatprep.subr.bf16.mxu0 %v3282_v40 }
  0xd0   :  { %3285 = vmatpush3.bf16.msra.mxu0 %v3284_v43 }
  0xd1   :  { %3297 = vmatpush3.bf16.msra.mxu1 %v3296_v52  ;;  %v3318_v52 = vpack.c.bf16 %v2768_v51, %v2767_v50 }
  0xd2   :  { %3299 = vmatprep.subr.bf16.mxu1 %v3298_v61 }
  0xd3   :  { %3319 = vmatprep.subr.bf16.mxu0 %v3318_v52 }
  0xd5   :  { %3301 = vmatpush3.bf16.msra.mxu1 %v3300_v1  ;;  %v4034_v1 = vld [vmem:[%s4772_s3 + $0x200] sm:$0xff] }
  0xd6   :  { %3303 = vmatprep.subr.bf16.mxu1 %v3302_v11  ;;  %v4079_v11 = vld [vmem:[%s4772_s3 + $0x398] sm:$0xff]  ;;  %v3320_v20 = vpack.c.bf16 %v4039_v2, %v4034_v1 }
  0xd7   :  { %v3354_v24 = vpack.c.bf16 %v4079_v11, %v4074_v10  ;;  %v2805_v11 = vld [vmem:[%s4772_s3 + $0x3b0] sm:$0xff] }
  0xd9   :  { %3305 = vmatpush3.bf16.msra.mxu1 %v3304_v19  ;;  %v4113_v19 = vld [vmem:[%s4772_s3 + $0x3a8] sm:$0xff] }
  0xda   :  { %3307 = vmatprep.subr.bf16.mxu1 %v3306_v22  ;;  %v3322_v22 = vpack.c.bf16 %v4059_v7, %v4054_v6  ;;  %v3358_v29 = vpack.c.bf16 %v4113_v19, %v4108_v18  ;;  %v2756_v6 = vld [vmem:[%s4772_s3 + $0x228] sm:$0xff] }
  0xdb   :  { %v3328_v10 = vpack.c.bf16 %v2756_v6, %v2755_v5  ;;  %v2808_v18 = vld [vmem:[%s4772_s3 + $0x3c8] sm:$0xff]  ;;  %v2782_v5 = vld [vmem:[%s4772_s3 + $0x2f8] sm:$0xff] }
  0xdd   :  { %3309 = vmatpush3.bf16.msra.mxu1 %v3308_v28  ;;  %v3326_v28 = vpack.c.bf16 %v4103_v17, %v4096_v15  ;;  %v2776_v15 = vld [vmem:[%s4772_s3 + $0x2c8] sm:$0xff] }
  0xde   :  { %3311 = vmatprep.subr.bf16.mxu1 %v3310_v34 }
  0xe1   :  { %3313 = vmatpush3.bf16.msra.mxu1 %v3312_v37 }
  0xe2   :  { %3315 = vmatprep.subr.bf16.mxu1 %v3314_v46 }
  0xe5   :  { %3317 = vmatpush3.bf16.msra.mxu1 %v3316_v49 }
  0xe6   :  { %3351 = vmatprep.subr.bf16.mxu1 %v3350_v55 }
 0x157   :  { %v196_v56 = vpop.f32.mrb[0].mxu1 }
 0x158   :  { %v198_v57 = vpop.f32.mrb[1].mxu1 }
 0x183   :  { %v838_v58 = vpop.f32.mrb[0].mxu0 }
 0x184   :  { %v3522_v59 = vadd.f32 %v838_v58, %v196_v56  ;;  %v840_v60 = vpop.f32.mrb[1].mxu0 }
 0x185   :  { %v3523_v61 = vadd.f32 %v840_v60, %v198_v57 }
 0x186   :  { %v851_v63 = vadd.f32 %v3522_v59, %v849_v62 }
 0x187   :  { %v852_v0 = vadd.f32 %v3523_v61, %v849_v62 }
 0x188   :  { %v4081_v12 = vmax.f32 %v851_v63, 0.0 }
 0x189   :  { %v4098_v16 = vmax.f32 %v852_v0, 0.0 }
 0x18a   :  { %v1667_v27 = vrot.slane %v4081_v12, 1  ;;  %v1846_v30 = vrot.slane %v4081_v12, 2  ;;  %v1960_v34 = vrot.slane %v4081_v12, 3  ;;  %v2074_v35 = vrot.slane %v4081_v12, 4 }
 0x18b   :  { %v1668_v33 = vrot.slane %v4098_v16, 1  ;;  %v1847_v37 = vrot.slane %v4098_v16, 2  ;;  %v1961_v38 = vrot.slane %v4098_v16, 3  ;;  %v2075_v39 = vrot.slane %v4098_v16, 4 }
 0x18c   :  { %v2189_v41 = vrot.slane %v4098_v16, 5  ;;  %v2303_v42 = vrot.slane %v4098_v16, 6  ;;  %v2188_v43 = vrot.slane %v4081_v12, 5  ;;  %v2417_v45 = vrot.slane %v4098_v16, 7 }
 0x18d   :  { %v2302_v46 = vrot.slane %v4081_v12, 6  ;;  %v2416_v47 = vrot.slane %v4081_v12, 7 }
 0x19b   :  { %v1613_v26 = vpop.f32.mrb[2].mxu1 }
 0x19c   :  { %v1620_v31 = vadd.f32 %v1613_v26, %v849_v62  ;;  %v1615_v32 = vpop.f32.mrb[3].mxu1  ;;  %v2773_v26 = vld [vmem:[%s4772_s3 + $0x2b0] sm:$0xff] }
 0x19d   :  { %v1621_v36 = vadd.f32 %v1615_v32, %v849_v62 }
 0x19e   :  { %v1622_v40 = vmax.f32 %v1620_v31, 0.0 }
 0x19f   :  { %v1623_v44 = vmax.f32 %v1621_v36, 0.0 }
 0x1a0   :  { %v1671_v48 = vsel %vm1630_vm10, %v1667_v27, %v1622_v40  ;;  %v1626_v49 = vrot.slane %v1622_v40, 7  ;;  %v1850_v50 = vrot.slane %v1622_v40, 1  ;;  %v1964_v51 = vrot.slane %v1622_v40, 2  ;;  %v2774_v27 = vld [vmem:[%s4772_s3 + $0x2b8] sm:$0xff] }
 0x1a1   :  { %v1672_v52 = vsel %vm1630_vm10, %v1668_v33, %v1623_v44  ;;  %v1627_v53 = vrot.slane %v1623_v44, 7  ;;  %v1851_v54 = vrot.slane %v1623_v44, 1  ;;  %v1965_v55 = vrot.slane %v1623_v44, 2 }
 0x1a2   :  { %1770 = vmatprep.mubr.f32.mxu0 %v1672_v52  ;;  %v1631_v56 = vsel %vm1630_vm10, %v4081_v12, %v1626_v49  ;;  %v4150_v57 = vsel %vm1630_vm10, %v1846_v30, %v1850_v50  ;;  %v2079_v58 = vrot.slane %v1623_v44, 3  ;;  %v4153_v59 = vsel %vm1630_vm10, %v1960_v34, %v1964_v51  ;;  %v2761_v49 = vld [vmem:[%s4772_s3 + $0x250] sm:$0xff]  ;;  %v2762_v50 = vld [vmem:[%s4772_s3 + $0x258] sm:$0xff]  ;;  %v2779_v52 = vld [vmem:[%s4772_s3 + $0x2e0] sm:$0xff] }
 0x1a3   :  { %1771 = vmatmul.mubr.f32.vlgmr.msra.gmra.mrb[2].mxu0 %v1671_v48  ;;  %v1632_v60 = vsel %vm1630_vm10, %v4098_v16, %v1627_v53  ;;  %v1855_v61 = vsel %vm1630_vm10, %v1847_v37, %v1851_v54  ;;  %v1969_v62 = vsel %vm1630_vm10, %v1961_v38, %v1965_v55  ;;  %v2193_v63 = vrot.slane %v1623_v44, 4  ;;  %v2757_v37 = vld [vmem:[%s4772_s3 + $0x230] sm:$0xff]  ;;  %v2760_v38 = vld [vmem:[%s4772_s3 + $0x248] sm:$0xff] }
 0x1a4   :  { %3321 = vmatpush3.bf16.msra.mxu0 %v3320_v20  ;;  %1840 = vmatprep.mubr.f32.mxu1 %v1632_v60  ;;  %v4160_v0 = vsel %vm1630_vm10, %v2075_v39, %v2079_v58  ;;  %v2078_v1 = vrot.slane %v1622_v40, 3  ;;  %v2307_v2 = vrot.slane %v1623_v44, 5  ;;  %v2192_v3 = vrot.slane %v1622_v40, 4  ;;  %v2780_v53 = vld [vmem:[%s4772_s3 + $0x2e8] sm:$0xff]  ;;  %v2793_v55 = vld [vmem:[%s4772_s3 + $0x350] sm:$0xff]  ;;  %v2811_v60 = vld [vmem:[%s4772_s3 + $0x3e0] sm:$0xff] }
 0x1a5   :  { %1953 = vmatprep.mubr.f32.mxu0 %v1855_v61  ;;  %1841 = vmatmul.mubr.f32.vlgmr.msra.gmra.mrb[4].mxu1 %v1631_v56  ;;  %v4169_v7 = vsel %vm1630_vm10, %v2189_v41, %v2193_v63  ;;  %v2421_v12 = vrot.slane %v1623_v44, 6  ;;  %v2306_v16 = vrot.slane %v1622_v40, 5  ;;  %v2420_v20 = vrot.slane %v1622_v40, 6  ;;  %v2777_v40 = vld [vmem:[%s4772_s3 + $0x2d0] sm:$0xff]  ;;  %v2778_v41 = vld [vmem:[%s4772_s3 + $0x2d8] sm:$0xff]  ;;  %v2792_v44 = vld [vmem:[%s4772_s3 + $0x348] sm:$0xff] }
 0x1a6   :  { %3353 = vmatpush3.bf16.msra.mxu1 %v3352_v21  ;;  %3323 = vmatprep.subr.bf16.mxu0 %v3322_v22  ;;  %v4178_v30 = vsel %vm1630_vm10, %v2074_v35, %v2078_v1  ;;  %v4181_v31 = vsel %vm1630_vm10, %v2303_v42, %v2307_v2  ;;  %v4184_v32 = vsel %vm1630_vm10, %v2188_v43, %v2192_v3  ;;  %v2787_v21 = vld [vmem:[%s4772_s3 + $0x320] sm:$0xff]  ;;  %v2788_v22 = vld [vmem:[%s4772_s3 + $0x328] sm:$0xff]  ;;  %v2794_v56 = vld [vmem:[%s4772_s3 + $0x358] sm:$0xff] }
 0x1a7   :  { %2067 = vmatprep.mubr.f32.mxu1 %v1969_v62  ;;  %3355 = vmatprep.subr.bf16.mxu1 %v3354_v24  ;;  %v4196_v33 = vsel %vm1630_vm10, %v2417_v45, %v2421_v12  ;;  %v4199_v34 = vsel %vm1630_vm10, %v2302_v46, %v2306_v16  ;;  %v4202_v35 = vsel %vm1630_vm10, %v2416_v47, %v2420_v20  ;;  %v2806_v24 = vld [vmem:[%s4772_s3 + $0x3b8] sm:$0xff]  ;;  %v2791_v43 = vld [vmem:[%s4772_s3 + $0x340] sm:$0xff]  ;;  %v2809_v46 = vld [vmem:[%s4772_s3 + $0x3d0] sm:$0xff] }
 0x1a8   :  { %3325 = vmatpush3.bf16.msra.mxu0 %v3324_v23  ;;  %v3330_v36 = vpack.c.bf16 %v2774_v27, %v2773_v26  ;;  %v3360_v9 = vpack.c.bf16 %v2788_v22, %v2787_v21  ;;  %v2775_v23 = vld [vmem:[%s4772_s3 + $0x2c0] sm:$0xff]  ;;  %v3362_v17 = vpack.c.bf16 %v2806_v24, %v2805_v11  ;;  %v3332_v14 = vpack.c.bf16 %v2758_v8, %v2757_v37  ;;  %v2810_v47 = vld [vmem:[%s4772_s3 + $0x3d8] sm:$0xff]  ;;  %v2812_v61 = vld [vmem:[%s4772_s3 + $0x3e8] sm:$0xff] }
 0x1a9   :  { %3327 = vmatprep.subr.bf16.mxu0 %v3326_v28  ;;  %v2789_v28 = vld [vmem:[%s4772_s3 + $0x330] sm:$0xff]  ;;  %v3334_v19 = vpack.c.bf16 %v2776_v15, %v2775_v23  ;;  %v3338_v48 = vpack.c.bf16 %v2778_v41, %v2777_v40  ;;  %v3368_v51 = vpack.c.bf16 %v2792_v44, %v2791_v43  ;;  %v3370_v54 = vpack.c.bf16 %v2810_v47, %v2809_v46  ;;  %v2763_v63 = vld [vmem:[%s4772_s3 + $0x260] sm:$0xff]  ;;  %v2764_v1 = vld [vmem:[%s4772_s3 + $0x268] sm:$0xff] }
 0x1aa   :  { %3357 = vmatpush3.bf16.msra.mxu1 %v3356_v25  ;;  %v2807_v25 = vld [vmem:[%s4772_s3 + $0x3c0] sm:$0xff]  ;;  %v3364_v39 = vpack.c.bf16 %v2790_v13, %v2789_v28  ;;  %v3340_v58 = vpack.c.bf16 %v2762_v50, %v2761_v49  ;;  %v3342_v62 = vpack.c.bf16 %v2780_v53, %v2779_v52  ;;  %v3372_v2 = vpack.c.bf16 %v2794_v56, %v2793_v55  ;;  %v2781_v3 = vld [vmem:[%s4772_s3 + $0x2f0] sm:$0xff]  ;;  %v2796_v16 = vld [vmem:[%s4772_s3 + $0x368] sm:$0xff] }
 0x1ab   :  { %3359 = vmatprep.subr.bf16.mxu1 %v3358_v29  ;;  %v2759_v29 = vld [vmem:[%s4772_s3 + $0x240] sm:$0xff]  ;;  %v3366_v42 = vpack.c.bf16 %v2808_v18, %v2807_v25  ;;  %v3374_v6 = vpack.c.bf16 %v2812_v61, %v2811_v60  ;;  %v3344_v20 = vpack.c.bf16 %v2764_v1, %v2763_v63  ;;  %v2813_v26 = vld [vmem:[%s4772_s3 + $0x3f0] sm:$0xff]  ;;  %v2814_v27 = vld [vmem:[%s4772_s3 + $0x3f8] sm:$0xff]  ;;  %v3346_v21 = vpack.c.bf16 %v2782_v5, %v2781_v3 }
 0x1ac   :  { %3329 = vmatpush3.bf16.msra.mxu0 %v3328_v10  ;;  %v3336_v45 = vpack.c.bf16 %v2760_v38, %v2759_v29  ;;  %v2795_v12 = vld [vmem:[%s4772_s3 + $0x360] sm:$0xff]  ;;  %v2765_v22 = vld [vmem:[%s4772_s3 + $0x270] sm:$0xff]  ;;  %v2766_v10 = vld [vmem:[%s4772_s3 + $0x278] sm:$0xff]  ;;  %v3378_v37 = vpack.c.bf16 %v2814_v27, %v2813_v26 }
 0x1ad   :  { %3331 = vmatprep.subr.bf16.mxu0 %v3330_v36  ;;  %v3376_v11 = vpack.c.bf16 %v2796_v16, %v2795_v12  ;;  %v2831_v24 = vld [vmem:[%s4772_s3 + $0x480] sm:$0xff]  ;;  %v2832_v36 = vld [vmem:[%s4772_s3 + $0x488] sm:$0xff]  ;;  %v2797_v8 = vld [vmem:[%s4772_s3 + $0x370] sm:$0xff]  ;;  %v3348_v23 = vpack.c.bf16 %v2766_v10, %v2765_v22 }
 0x1ae   :  { %3361 = vmatpush3.bf16.msra.mxu1 %v3360_v9  ;;  %v2798_v9 = vld [vmem:[%s4772_s3 + $0x378] sm:$0xff]  ;;  %v2863_v15 = vld [vmem:[%s4772_s3 + $0x580] sm:$0xff]  ;;  %v3382_v28 = vpack.c.bf16 %v2832_v36, %v2831_v24  ;;  %v2833_v18 = vld [vmem:[%s4772_s3 + $0x490] sm:$0xff] }
 0x1af   :  { %3363 = vmatprep.subr.bf16.mxu1 %v3362_v17  ;;  %v2864_v17 = vld [vmem:[%s4772_s3 + $0x588] sm:$0xff]  ;;  %v2815_v13 = vld [vmem:[%s4772_s3 + $0x400] sm:$0xff]  ;;  %v3380_v25 = vpack.c.bf16 %v2798_v9, %v2797_v8  ;;  %v2865_v41 = vld [vmem:[%s4772_s3 + $0x590] sm:$0xff] }
 0x1b0   :  { %3333 = vmatpush3.bf16.msra.mxu0 %v3332_v14  ;;  %v2816_v14 = vld [vmem:[%s4772_s3 + $0x408] sm:$0xff]  ;;  %v3414_v29 = vpack.c.bf16 %v2864_v17, %v2863_v15  ;;  %v2847_v38 = vld [vmem:[%s4772_s3 + $0x500] sm:$0xff]  ;;  %v2817_v44 = vld [vmem:[%s4772_s3 + $0x410] sm:$0xff] }
 0x1b1   :  { %3335 = vmatprep.subr.bf16.mxu0 %v3334_v19  ;;  %v2834_v19 = vld [vmem:[%s4772_s3 + $0x498] sm:$0xff]  ;;  %v3384_v40 = vpack.c.bf16 %v2816_v14, %v2815_v13  ;;  %v2835_v47 = vld [vmem:[%s4772_s3 + $0x4a0] sm:$0xff]  ;;  %v2849_v50 = vld [vmem:[%s4772_s3 + $0x510] sm:$0xff] }
 0x1b2   :  { %3365 = vmatpush3.bf16.msra.mxu1 %v3364_v39  ;;  %v2848_v39 = vld [vmem:[%s4772_s3 + $0x508] sm:$0xff]  ;;  %v3386_v43 = vpack.c.bf16 %v2834_v19, %v2833_v18  ;;  %v2867_v53 = vld [vmem:[%s4772_s3 + $0x5a0] sm:$0xff]  ;;  %v2869_v63 = vld [vmem:[%s4772_s3 + $0x5b0] sm:$0xff] }
 0x1b3   :  { %3367 = vmatprep.subr.bf16.mxu1 %v3366_v42  ;;  %v2866_v42 = vld [vmem:[%s4772_s3 + $0x598] sm:$0xff]  ;;  %v3416_v46 = vpack.c.bf16 %v2848_v39, %v2847_v38  ;;  %v2819_v55 = vld [vmem:[%s4772_s3 + $0x420] sm:$0xff]  ;;  %v2821_v3 = vld [vmem:[%s4772_s3 + $0x430] sm:$0xff] }
 0x1b4   :  { %3337 = vmatpush3.bf16.msra.mxu0 %v3336_v45  ;;  %v2818_v45 = vld [vmem:[%s4772_s3 + $0x418] sm:$0xff]  ;;  %v3418_v49 = vpack.c.bf16 %v2866_v42, %v2865_v41  ;;  %v2851_v61 = vld [vmem:[%s4772_s3 + $0x520] sm:$0xff]  ;;  %v2840_v16 = vld [vmem:[%s4772_s3 + $0x4c8] sm:$0xff] }
 0x1b5   :  { %3339 = vmatprep.subr.bf16.mxu0 %v3338_v48  ;;  %v2836_v48 = vld [vmem:[%s4772_s3 + $0x4a8] sm:$0xff]  ;;  %v3388_v52 = vpack.c.bf16 %v2818_v45, %v2817_v44  ;;  %v2870_v1 = vld [vmem:[%s4772_s3 + $0x5b8] sm:$0xff]  ;;  %v2839_v12 = vld [vmem:[%s4772_s3 + $0x4c0] sm:$0xff] }
 0x1b6   :  { %3369 = vmatpush3.bf16.msra.mxu1 %v3368_v51  ;;  %v2850_v51 = vld [vmem:[%s4772_s3 + $0x518] sm:$0xff]  ;;  %v2853_v26 = vld [vmem:[%s4772_s3 + $0x530] sm:$0xff]  ;;  %v2871_v22 = vld [vmem:[%s4772_s3 + $0x5c0] sm:$0xff] }
 0x1b7   :  { %3371 = vmatprep.subr.bf16.mxu1 %v3370_v54  ;;  %v3390_v54 = vpack.c.bf16 %v2836_v48, %v2835_v47  ;;  %v3420_v56 = vpack.c.bf16 %v2850_v51, %v2849_v50  ;;  %v2822_v5 = vld [vmem:[%s4772_s3 + $0x438] sm:$0xff]  ;;  %v2872_v10 = vld [vmem:[%s4772_s3 + $0x5c8] sm:$0xff]  ;;  %v2823_v24 = vld [vmem:[%s4772_s3 + $0x440] sm:$0xff] }
 0x1b8   :  { %3341 = vmatpush3.bf16.msra.mxu0 %v3340_v58  ;;  %v2837_v58 = vld [vmem:[%s4772_s3 + $0x4b0] sm:$0xff]  ;;  %v2854_v27 = vld [vmem:[%s4772_s3 + $0x538] sm:$0xff]  ;;  %v2824_v36 = vld [vmem:[%s4772_s3 + $0x448] sm:$0xff] }
 0x1b9   :  { %3343 = vmatprep.subr.bf16.mxu0 %v3342_v62  ;;  %v2852_v62 = vld [vmem:[%s4772_s3 + $0x528] sm:$0xff]  ;;  %v2841_v8 = vld [vmem:[%s4772_s3 + $0x4d0] sm:$0xff]  ;;  %v2842_v9 = vld [vmem:[%s4772_s3 + $0x4d8] sm:$0xff] }
 0x1ba   :  { %3373 = vmatpush3.bf16.msra.mxu1 %v3372_v2  ;;  %v2855_v15 = vld [vmem:[%s4772_s3 + $0x540] sm:$0xff]  ;;  %v2856_v17 = vld [vmem:[%s4772_s3 + $0x548] sm:$0xff]  ;;  %v2873_v13 = vld [vmem:[%s4772_s3 + $0x5d0] sm:$0xff] }
 0x1bb   :  { %3375 = vmatprep.subr.bf16.mxu1 %v3374_v6  ;;  %v3424_v6 = vpack.c.bf16 %v2852_v62, %v2851_v61  ;;  %v2874_v14 = vld [vmem:[%s4772_s3 + $0x5d8] sm:$0xff]  ;;  %v2825_v18 = vld [vmem:[%s4772_s3 + $0x450] sm:$0xff]  ;;  %v2843_v38 = vld [vmem:[%s4772_s3 + $0x4e0] sm:$0xff] }
 0x1bc   :  { %3345 = vmatpush3.bf16.msra.mxu0 %v3344_v20  ;;  %v3426_v20 = vpack.c.bf16 %v2870_v1, %v2869_v63  ;;  %v2826_v19 = vld [vmem:[%s4772_s3 + $0x458] sm:$0xff]  ;;  %v2844_v39 = vld [vmem:[%s4772_s3 + $0x4e8] sm:$0xff]  ;;  %v2857_v41 = vld [vmem:[%s4772_s3 + $0x550] sm:$0xff] }
 0x1bd   :  { %3347 = vmatprep.subr.bf16.mxu0 %v3346_v21  ;;  %v3396_v21 = vpack.c.bf16 %v2822_v5, %v2821_v3  ;;  %v2858_v42 = vld [vmem:[%s4772_s3 + $0x558] sm:$0xff]  ;;  %v2875_v44 = vld [vmem:[%s4772_s3 + $0x5e0] sm:$0xff]  ;;  %v2876_v45 = vld [vmem:[%s4772_s3 + $0x5e8] sm:$0xff] }
 0x1be   :  { %3377 = vmatpush3.bf16.msra.mxu1 %v3376_v11  ;;  %v3398_v11 = vpack.c.bf16 %v2840_v16, %v2839_v12  ;;  %v2827_v47 = vld [vmem:[%s4772_s3 + $0x460] sm:$0xff]  ;;  %v2828_v48 = vld [vmem:[%s4772_s3 + $0x468] sm:$0xff]  ;;  %v2845_v50 = vld [vmem:[%s4772_s3 + $0x4f0] sm:$0xff] }
 0x1bf   :  { %3379 = vmatprep.subr.bf16.mxu1 %v3378_v37  ;;  %v3428_v37 = vpack.c.bf16 %v2854_v27, %v2853_v26  ;;  %v2846_v51 = vld [vmem:[%s4772_s3 + $0x4f8] sm:$0xff]  ;;  %v2895_v61 = vld [vmem:[%s4772_s3 + $0x680] sm:$0xff]  ;;  %v2896_v62 = vld [vmem:[%s4772_s3 + $0x688] sm:$0xff] }
 0x1c0   :  { %3349 = vmatpush3.bf16.msra.mxu0 %v3348_v23  ;;  %v3430_v23 = vpack.c.bf16 %v2872_v10, %v2871_v22  ;;  %v2861_v63 = vld [vmem:[%s4772_s3 + $0x570] sm:$0xff]  ;;  %v2862_v1 = vld [vmem:[%s4772_s3 + $0x578] sm:$0xff]  ;;  %v2927_v3 = vld [vmem:[%s4772_s3 + $0x780] sm:$0xff] }
 0x1c1   :  { %3383 = vmatprep.subr.bf16.mxu0 %v3382_v28  ;;  %v3400_v28 = vpack.c.bf16 %v2824_v36, %v2823_v24  ;;  %v2928_v5 = vld [vmem:[%s4772_s3 + $0x788] sm:$0xff]  ;;  %v2879_v12 = vld [vmem:[%s4772_s3 + $0x600] sm:$0xff]  ;;  %v2897_v26 = vld [vmem:[%s4772_s3 + $0x690] sm:$0xff] }
 0x1c2   :  { %3381 = vmatpush3.bf16.msra.mxu1 %v3380_v25  ;;  %v3402_v25 = vpack.c.bf16 %v2842_v9, %v2841_v8  ;;  %v2880_v16 = vld [vmem:[%s4772_s3 + $0x608] sm:$0xff]  ;;  %v2898_v27 = vld [vmem:[%s4772_s3 + $0x698] sm:$0xff]  ;;  %v2911_v22 = vld [vmem:[%s4772_s3 + $0x700] sm:$0xff] }
 0x1c3   :  { %1954 = vmatmul.mubr.f32.vlgmr.msra.gmra.mrb[4].mxu0 %v4150_v57  ;;  %3415 = vmatprep.subr.bf16.mxu1 %v3414_v29  ;;  %v2868_v57 = vld [vmem:[%s4772_s3 + $0x5a8] sm:$0xff]  ;;  %v3432_v29 = vpack.c.bf16 %v2856_v17, %v2855_v15  ;;  %v2929_v24 = vld [vmem:[%s4772_s3 + $0x790] sm:$0xff]  ;;  %v2930_v36 = vld [vmem:[%s4772_s3 + $0x798] sm:$0xff] }
 0x1c4   :  { %3385 = vmatpush3.bf16.msra.mxu0 %v3384_v40  ;;  %2181 = vmatprep.mubr.f32.mxu0 %v4160_v0  ;;  %v2820_v0 = vld [vmem:[%s4772_s3 + $0x428] sm:$0xff]  ;;  %v3422_v60 = vpack.c.bf16 %v2868_v57, %v2867_v53  ;;  %v3434_v40 = vpack.c.bf16 %v2874_v14, %v2873_v13  ;;  %v2859_v53 = vld [vmem:[%s4772_s3 + $0x560] sm:$0xff]  ;;  %v2881_v8 = vld [vmem:[%s4772_s3 + $0x610] sm:$0xff] }
 0x1c5   :  { %2068 = vmatmul.mubr.f32.vlgmr.msra.gmra.mrb[6].mxu1 %v4153_v59  ;;  %3387 = vmatprep.subr.bf16.mxu0 %v3386_v43  ;;  %v2838_v59 = vld [vmem:[%s4772_s3 + $0x4b8] sm:$0xff]  ;;  %v3404_v43 = vpack.c.bf16 %v2826_v19, %v2825_v18  ;;  %v2860_v57 = vld [vmem:[%s4772_s3 + $0x568] sm:$0xff]  ;;  %v2899_v15 = vld [vmem:[%s4772_s3 + $0x6a0] sm:$0xff] }
 0x1c6   :  { %3417 = vmatpush3.bf16.msra.mxu1 %v3416_v46  ;;  %2295 = vmatprep.mubr.f32.mxu1 %v4169_v7  ;;  %v3392_v7 = vpack.c.bf16 %v2820_v0, %v2819_v55  ;;  %v3394_v2 = vpack.c.bf16 %v2838_v59, %v2837_v58  ;;  %v3406_v46 = vpack.c.bf16 %v2844_v39, %v2843_v38  ;;  %v2877_v55 = vld [vmem:[%s4772_s3 + $0x5f0] sm:$0xff]  ;;  %v2878_v0 = vld [vmem:[%s4772_s3 + $0x5f8] sm:$0xff]  ;;  %v2912_v10 = vld [vmem:[%s4772_s3 + $0x708] sm:$0xff] }
 0x1c7   :  { %3419 = vmatprep.subr.bf16.mxu1 %v3418_v49  ;;  %v3436_v49 = vpack.c.bf16 %v2858_v42, %v2857_v41  ;;  %v2829_v58 = vld [vmem:[%s4772_s3 + $0x470] sm:$0xff]  ;;  %v2830_v59 = vld [vmem:[%s4772_s3 + $0x478] sm:$0xff]  ;;  %v2900_v17 = vld [vmem:[%s4772_s3 + $0x6a8] sm:$0xff] }
 0x1c8   :  { %3389 = vmatpush3.bf16.msra.mxu0 %v3388_v52  ;;  %v3438_v52 = vpack.c.bf16 %v2876_v45, %v2875_v44  ;;  %v2882_v9 = vld [vmem:[%s4772_s3 + $0x618] sm:$0xff]  ;;  %v2913_v13 = vld [vmem:[%s4772_s3 + $0x710] sm:$0xff]  ;;  %v2931_v18 = vld [vmem:[%s4772_s3 + $0x7a0] sm:$0xff]  ;;  %v3454_v19 = vpack.c.bf16 %v2900_v17, %v2899_v15 }
 0x1c9   :  { %3391 = vmatprep.subr.bf16.mxu0 %v3390_v54  ;;  %v3408_v54 = vpack.c.bf16 %v2828_v48, %v2827_v47  ;;  %v2914_v14 = vld [vmem:[%s4772_s3 + $0x718] sm:$0xff]  ;;  %v2901_v39 = vld [vmem:[%s4772_s3 + $0x6b0] sm:$0xff]  ;;  %v2915_v41 = vld [vmem:[%s4772_s3 + $0x720] sm:$0xff] }
 0x1ca   :  { %3421 = vmatpush3.bf16.msra.mxu1 %v3420_v56  ;;  %v3410_v56 = vpack.c.bf16 %v2846_v51, %v2845_v50  ;;  %v3484_v38 = vpack.c.bf16 %v2914_v14, %v2913_v13  ;;  %v2916_v42 = vld [vmem:[%s4772_s3 + $0x728] sm:$0xff]  ;;  %v2934_v44 = vld [vmem:[%s4772_s3 + $0x7b8] sm:$0xff] }
 0x1cb   :  { %3423 = vmatprep.subr.bf16.mxu1 %v3422_v60  ;;  %v3440_v60 = vpack.c.bf16 %v2860_v57, %v2859_v53  ;;  %v2886_v47 = vld [vmem:[%s4772_s3 + $0x638] sm:$0xff]  ;;  %v3488_v48 = vpack.c.bf16 %v2916_v42, %v2915_v41  ;;  %v2904_v50 = vld [vmem:[%s4772_s3 + $0x6c8] sm:$0xff]  ;;  %v2539_v42 = vld [vmem:[%s4774_s5] sm:$0xff] }
 0x1cc   :  { %3393 = vmatpush3.bf16.msra.mxu0 %v3392_v7  ;;  %v3442_v7 = vpack.c.bf16 %v2878_v0, %v2877_v55  ;;  %v2918_v53 = vld [vmem:[%s4772_s3 + $0x738] sm:$0xff]  ;;  %v2936_v55 = vld [vmem:[%s4772_s3 + $0x7c8] sm:$0xff] }
 0x1cd   :  { %3395 = vmatprep.subr.bf16.mxu0 %v3394_v2  ;;  %v3412_v2 = vpack.c.bf16 %v2830_v59, %v2829_v58  ;;  %v2888_v58 = vld [vmem:[%s4772_s3 + $0x648] sm:$0xff]  ;;  %v2910_v15 = vld [vmem:[%s4772_s3 + $0x6f8] sm:$0xff] }
 0x1ce   :  { %3425 = vmatpush3.bf16.msra.mxu1 %v3424_v6  ;;  %v3446_v6 = vpack.c.bf16 %v2896_v62, %v2895_v61  ;;  %v2906_v61 = vld [vmem:[%s4772_s3 + $0x6d8] sm:$0xff]  ;;  %v2924_v13 = vld [vmem:[%s4772_s3 + $0x768] sm:$0xff] }
 0x1cf   :  { %3427 = vmatprep.subr.bf16.mxu1 %v3426_v20  ;;  %v3444_v20 = vpack.c.bf16 %v2862_v1, %v2861_v63  ;;  %v2920_v63 = vld [vmem:[%s4772_s3 + $0x748] sm:$0xff] }
 0x1d0   :  { %3397 = vmatpush3.bf16.msra.mxu0 %v3396_v21  ;;  %v3478_v21 = vpack.c.bf16 %v2928_v5, %v2927_v3  ;;  %v2938_v3 = vld [vmem:[%s4772_s3 + $0x7d8] sm:$0xff] }
 0x1d1   :  { %3399 = vmatprep.subr.bf16.mxu0 %v3398_v11  ;;  %v3448_v11 = vpack.c.bf16 %v2880_v16, %v2879_v12  ;;  %v2890_v12 = vld [vmem:[%s4772_s3 + $0x658] sm:$0xff] }
 0x1d2   :  { %3429 = vmatpush3.bf16.msra.mxu1 %v3428_v37  ;;  %v3450_v37 = vpack.c.bf16 %v2898_v27, %v2897_v26  ;;  %v2908_v26 = vld [vmem:[%s4772_s3 + $0x6e8] sm:$0xff] }
 0x1d3   :  { %3431 = vmatprep.subr.bf16.mxu1 %v3430_v23  ;;  %v3480_v23 = vpack.c.bf16 %v2912_v10, %v2911_v22  ;;  %v2922_v22 = vld [vmem:[%s4772_s3 + $0x758] sm:$0xff] }
 0x1d4   :  { %3401 = vmatpush3.bf16.msra.mxu0 %v3400_v28  ;;  %v3482_v28 = vpack.c.bf16 %v2930_v36, %v2929_v24  ;;  %v2940_v24 = vld [vmem:[%s4772_s3 + $0x7e8] sm:$0xff] }
 0x1d5   :  { %3403 = vmatprep.subr.bf16.mxu0 %v3402_v25  ;;  %v3452_v25 = vpack.c.bf16 %v2882_v9, %v2881_v8  ;;  %v2892_v8 = vld [vmem:[%s4772_s3 + $0x668] sm:$0xff] }
 0x1d6   :  { %3433 = vmatpush3.bf16.msra.mxu1 %v3432_v29  ;;  %v2883_v29 = vld [vmem:[%s4772_s3 + $0x620] sm:$0xff] }
 0x1d7   :  { %3435 = vmatprep.subr.bf16.mxu1 %v3434_v40 }
 0x1d8   :  { %3405 = vmatpush3.bf16.msra.mxu0 %v3404_v43  ;;  %v2933_v43 = vld [vmem:[%s4772_s3 + $0x7b0] sm:$0xff] }
 0x1d9   :  { %3407 = vmatprep.subr.bf16.mxu0 %v3406_v46  ;;  %v2885_v46 = vld [vmem:[%s4772_s3 + $0x630] sm:$0xff]  ;;  %v3490_v51 = vpack.c.bf16 %v2934_v44, %v2933_v43  ;;  %v3606_v43 = vmov 0.0|0.0  }
 0x1da   :  { %3437 = vmatpush3.bf16.msra.mxu1 %v3436_v49  ;;  %v2903_v49 = vld [vmem:[%s4772_s3 + $0x6c0] sm:$0xff]  ;;  %v3460_v57 = vpack.c.bf16 %v2886_v47, %v2885_v46  ;;  %v2544_v47 = vld [vmem:[%s4774_s5 + $0x28] sm:$0xff] }
 0x1db   :  { %3439 = vmatprep.subr.bf16.mxu1 %v3438_v52  ;;  %v2917_v52 = vld [vmem:[%s4772_s3 + $0x730] sm:$0xff]  ;;  %v3462_v0 = vpack.c.bf16 %v2904_v50, %v2903_v49  ;;  %v2543_v46 = vld [vmem:[%s4774_s5 + $0x20] sm:$0xff]  ;;  %v2546_v50 = vld [vmem:[%s4774_s5 + $0x38] sm:$0xff] }
 0x1dc   :  { %3409 = vmatpush3.bf16.msra.mxu0 %v3408_v54  ;;  %v2935_v54 = vld [vmem:[%s4772_s3 + $0x7c0] sm:$0xff]  ;;  %v3492_v59 = vpack.c.bf16 %v2918_v53, %v2917_v52  ;;  %v2545_v49 = vld [vmem:[%s4774_s5 + $0x30] sm:$0xff] }
 0x1dd   :  { %3411 = vmatprep.subr.bf16.mxu0 %v3410_v56  ;;  %v2887_v56 = vld [vmem:[%s4772_s3 + $0x640] sm:$0xff]  ;;  %v3494_v62 = vpack.c.bf16 %v2936_v55, %v2935_v54 }
 0x1de   :  { %3441 = vmatpush3.bf16.msra.mxu1 %v3440_v60  ;;  %v2905_v60 = vld [vmem:[%s4772_s3 + $0x6d0] sm:$0xff]  ;;  %v3464_v1 = vpack.c.bf16 %v2888_v58, %v2887_v56 }
 0x1df   :  { %3443 = vmatprep.subr.bf16.mxu1 %v3442_v7  ;;  %v2919_v7 = vld [vmem:[%s4772_s3 + $0x740] sm:$0xff]  ;;  %v3466_v5 = vpack.c.bf16 %v2906_v61, %v2905_v60 }
 0x1e0   :  { %3413 = vmatpush3.bf16.msra.mxu0 %v3412_v2  ;;  %v2937_v2 = vld [vmem:[%s4772_s3 + $0x7d0] sm:$0xff]  ;;  %v3496_v16 = vpack.c.bf16 %v2920_v63, %v2919_v7 }
 0x1e1   :  { %3447 = vmatprep.subr.bf16.mxu0 %v3446_v6  ;;  %v2889_v6 = vld [vmem:[%s4772_s3 + $0x650] sm:$0xff]  ;;  %v3498_v27 = vpack.c.bf16 %v2938_v3, %v2937_v2 }
 0x1e2   :  { %3445 = vmatpush3.bf16.msra.mxu1 %v3444_v20  ;;  %v2907_v20 = vld [vmem:[%s4772_s3 + $0x6e0] sm:$0xff]  ;;  %v3468_v10 = vpack.c.bf16 %v2890_v12, %v2889_v6 }
 0x1e3   :  { %2182 = vmatmul.mubr.f32.vlgmr.msra.gmra.mrb[6].mxu0 %v4178_v30  ;;  %3479 = vmatprep.subr.bf16.mxu1 %v3478_v21  ;;  %v2932_v30 = vld [vmem:[%s4772_s3 + $0x7a8] sm:$0xff]  ;;  %v2921_v21 = vld [vmem:[%s4772_s3 + $0x750] sm:$0xff]  ;;  %v3470_v36 = vpack.c.bf16 %v2908_v26, %v2907_v20 }
 0x1e4   :  { %3449 = vmatpush3.bf16.msra.mxu0 %v3448_v11  ;;  %2409 = vmatprep.mubr.f32.mxu0 %v4181_v31  ;;  %v2884_v31 = vld [vmem:[%s4772_s3 + $0x628] sm:$0xff]  ;;  %v3486_v40 = vpack.c.bf16 %v2932_v30, %v2931_v18  ;;  %v2939_v11 = vld [vmem:[%s4772_s3 + $0x7e0] sm:$0xff]  ;;  %v3500_v9 = vpack.c.bf16 %v2922_v22, %v2921_v21  ;;  %v2942_v18 = vld [vmem:[%s4772_s3 + $0x7f8] sm:$0xff] }
 0x1e5   :  { %2296 = vmatmul.mubr.f32.vlgmr.msra.gmra.mrb[8].mxu1 %v4184_v32  ;;  %3451 = vmatprep.subr.bf16.mxu0 %v3450_v37  ;;  %v2902_v32 = vld [vmem:[%s4772_s3 + $0x6b8] sm:$0xff]  ;;  %v2891_v37 = vld [vmem:[%s4772_s3 + $0x660] sm:$0xff]  ;;  %v3502_v17 = vpack.c.bf16 %v2940_v24, %v2939_v11 }
 0x1e6   :  { %3481 = vmatpush3.bf16.msra.mxu1 %v3480_v23  ;;  %2523 = vmatprep.mubr.f32.mxu1 %v4196_v33  ;;  %v3456_v33 = vpack.c.bf16 %v2884_v31, %v2883_v29  ;;  %v3458_v45 = vpack.c.bf16 %v2902_v32, %v2901_v39  ;;  %v2909_v23 = vld [vmem:[%s4772_s3 + $0x6f0] sm:$0xff]  ;;  %v3472_v14 = vpack.c.bf16 %v2892_v8, %v2891_v37  ;;  %v2894_v29 = vld [vmem:[%s4772_s3 + $0x678] sm:$0xff] }
 0x1e7   :  { %3483 = vmatprep.subr.bf16.mxu1 %v3482_v28  ;;  %v2923_v28 = vld [vmem:[%s4772_s3 + $0x760] sm:$0xff]  ;;  %v3474_v30 = vpack.c.bf16 %v2910_v15, %v2909_v23  ;;  %v2925_v39 = vld [vmem:[%s4772_s3 + $0x770] sm:$0xff]  ;;  %v2926_v32 = vld [vmem:[%s4772_s3 + $0x778] sm:$0xff] }
 0x1e8   :  { %3453 = vmatpush3.bf16.msra.mxu0 %v3452_v25  ;;  %v2941_v25 = vld [vmem:[%s4772_s3 + $0x7f0] sm:$0xff]  ;;  %v3504_v31 = vpack.c.bf16 %v2924_v13, %v2923_v28  ;;  %v3508_v41 = vpack.c.bf16 %v2926_v32, %v2925_v39  ;;  %v2944_v23 = vld [vmem:[%s4775_s6] ss:$0 sm:$0xff] }
 0x1e9   :  { %3455 = vmatprep.subr.bf16.mxu0 %v3454_v19  ;;  %v2893_v19 = vld [vmem:[%s4772_s3 + $0x670] sm:$0xff] }
 0x1ea   :  { %3485 = vmatpush3.bf16.msra.mxu1 %v3484_v38  ;;  %v3506_v38 = vpack.c.bf16 %v2942_v18, %v2941_v25 }
 0x1eb   :  { %3487 = vmatprep.subr.bf16.mxu1 %v3486_v40  ;;  %v3476_v40 = vpack.c.bf16 %v2894_v29, %v2893_v19 }
 0x1ec   :  { %3457 = vmatpush3.bf16.msra.mxu0 %v3456_v33  ;;  %v2540_v33 = vld [vmem:[%s4774_s5 + $0x8] sm:$0xff] }
 0x1ed   :  { %3459 = vmatprep.subr.bf16.mxu0 %v3458_v45  ;;  %v3511_v44 = vpack.c.bf16 %v2540_v33, %v2539_v42  ;;  %v2541_v45 = vld [vmem:[%s4774_s5 + $0x10] sm:$0xff] }
 0x1ee   :  { %3489 = vmatpush3.bf16.msra.mxu1 %v3488_v48  ;;  %v3517_v48 = vpack.c.bf16 %v2544_v47, %v2543_v46 }
 0x1ef   :  { %3491 = vmatprep.subr.bf16.mxu1 %v3490_v51  ;;  %v3520_v51 = vpack.c.bf16 %v2546_v50, %v2545_v49 }
 0x1f0   :  { %3461 = vmatpush3.bf16.msra.mxu0 %v3460_v57 }
 0x1f1   :  { %3463 = vmatprep.subr.bf16.mxu0 %v3462_v0 }
 0x1f2   :  { %3493 = vmatpush3.bf16.msra.mxu1 %v3492_v59 }
 0x1f3   :  { %3495 = vmatprep.subr.bf16.mxu1 %v3494_v62 }
 0x1f4   :  { %3465 = vmatpush3.bf16.msra.mxu0 %v3464_v1 }
 0x1f5   :  { %3467 = vmatprep.subr.bf16.mxu0 %v3466_v5 }
 0x1f6   :  { %3497 = vmatpush3.bf16.msra.mxu1 %v3496_v16 }
 0x1f7   :  { %3499 = vmatprep.subr.bf16.mxu1 %v3498_v27 }
 0x1f8   :  { %3469 = vmatpush3.bf16.msra.mxu0 %v3468_v10 }
 0x1f9   :  { %3471 = vmatprep.subr.bf16.mxu0 %v3470_v36  ;;  %v2943_v36 = vld [vmem:[%s4773_s4] ss:$0 sm:$0xff]  ;;  %s3609_s4 = smov [#allocation2]  }
 0x1fa   :  { %3501 = vmatpush3.bf16.msra.mxu1 %v3500_v9  ;;  %s2648_s2 = sshll.u32 %s3609_s4, 4  ;;  %s2649_s2 = int_to_ptr.vmem [resolvable:$true] %s2648_s2 }
 0x1fb   :  { %3503 = vmatprep.subr.bf16.mxu1 %v3502_v17  ;;  %s3572_s6 = scalar_lea.vmem %s2649_s2, 32  ;;  %p3577_p1 = scmp.lt.s32.totalorder %s2649_s2, %s2649_s2 }
 0x1fc   :  { %3473 = vmatpush3.bf16.msra.mxu0 %v3472_v14  ;;  %v3608_v14 = vmov 6   ;;  %p3573_p0 = scmp.ne.s32.totalorder %s2649_s2, %s3572_s6  ;;  %p3578_p2 = scmp.lt.s32.totalorder %s3572_s6, %s3572_s6 }
 0x1fd   :  { %3475 = vmatprep.subr.bf16.mxu0 %v3474_v30  ;;  %3569 = vset.pattern.permute.xlu0 %v3608_v14 }
 0x1fe   :  { %3505 = vmatpush3.bf16.msra.mxu1 %v3504_v31  ;;  %p3579_p3 = por %p3578_p2, %p3577_p1 }
 0x1ff   :  { %3507 = vmatprep.subr.bf16.mxu1 %v3506_v38 }
 0x200   :  { %3477 = vmatpush3.bf16.msra.mxu0 %v3476_v40  ;;  %p3580_p4 = pnand %p3579_p3, %p3573_p0 }
 0x201   :  { %3510 = vmatprep.subr.bf16.mxu0 %v3606_v43 }
 0x202   :  { %3509 = vmatpush3.bf16.msra.mxu1 %v3508_v41 }
 0x203   :  { %2410 = vmatmul.mubr.f32.vlgmr.msra.gmra.mrb[8].mxu0 %v4199_v34  ;;  %v2542_v34 = vld [vmem:[%s4774_s5 + $0x18] sm:$0xff] }
 0x204   :  { %3512 = vmatpush3.bf16.msra.mxu0 %v3511_v44  ;;  %3251 = vmatprep.mubr.msk.f32.mxu0 %vm3607_vm11, %v3597_v4 }
 0x205   :  { %2524 = vmatmul.mubr.f32.vlgmr.msra.gmra.mrb[10].mxu1 %v4202_v35  ;;  %3513 = vmatprep.subr.bf16.mxu0 %v3606_v43  ;;  %v3514_v35 = vpack.c.bf16 %v2542_v34, %v2541_v45 }
 0x208   :  { %3515 = vmatpush3.bf16.msra.mxu0 %v3514_v35 }
 0x209   :  { %3516 = vmatprep.subr.bf16.mxu0 %v3606_v43 }
 0x20c   :  { %3518 = vmatpush3.bf16.msra.mxu0 %v3517_v48 }
 0x20d   :  { %3519 = vmatprep.subr.bf16.mxu0 %v3606_v43 }
 0x210   :  { %3521 = vmatpush3.bf16.msra.mxu0 %v3520_v51 }
 0x276   :  { %v2978_v52 = vpop.f32.mrb[2].mxu0 }
 0x277   :  { %v2979_v53 = vpop.f32.mrb[3].mxu0 }
 0x278   :  { %v2980_v57 = vadd.f32 %v2979_v53, %v2978_v52  ;;  %v3013_v54 = vpop.f32.mrb[4].mxu1 }
 0x279   :  { %v3014_v55 = vpop.f32.mrb[5].mxu1 }
 0x27a   :  { %v3015_v0 = vadd.f32 %v3014_v55, %v3013_v54 }
 0x27c   :  { %v1843_v56 = vadd.f32 %v3015_v0, %v2980_v57 }
 0x296   :  { %v3048_v58 = vpop.f32.mrb[4].mxu0 }
 0x297   :  { %v3049_v59 = vpop.f32.mrb[5].mxu0 }
 0x298   :  { %v3050_v60 = vadd.f32 %v3049_v59, %v3048_v58  ;;  %v3083_v61 = vpop.f32.mrb[6].mxu1 }
 0x299   :  { %v3084_v62 = vpop.f32.mrb[7].mxu1 }
 0x29a   :  { %v1959_v7 = vadd.f32 %v3050_v60, %v1843_v56  ;;  %v3085_v63 = vadd.f32 %v3084_v62, %v3083_v61 }
 0x29c   :  { %v2073_v1 = vadd.f32 %v3085_v63, %v1959_v7 }
 0x2b6   :  { %v3118_v2 = vpop.f32.mrb[6].mxu0 }
 0x2b7   :  { %v3119_v3 = vpop.f32.mrb[7].mxu0 }
 0x2b8   :  { %v3120_v5 = vadd.f32 %v3119_v3, %v3118_v2  ;;  %v3153_v4 = vpop.f32.mrb[8].mxu1 }
 0x2b9   :  { %v3154_v6 = vpop.f32.mrb[9].mxu1 }
 0x2ba   :  { %v2187_v12 = vadd.f32 %v3120_v5, %v2073_v1  ;;  %v3155_v16 = vadd.f32 %v3154_v6, %v3153_v4 }
 0x2bc   :  { %v2301_v20 = vadd.f32 %v3155_v16, %v2187_v12 }
 0x2d6   :  { %v3188_v26 = vpop.f32.mrb[8].mxu0 }
 0x2d7   :  { %v3189_v27 = vpop.f32.mrb[9].mxu0 }
 0x2d8   :  { %v3190_v21 = vadd.f32 %v3189_v27, %v3188_v26  ;;  %v3223_v22 = vpop.f32.mrb[10].mxu1 }
 0x2d9   :  { %v3224_v10 = vpop.f32.mrb[11].mxu1 }
 0x2da   :  { %v2415_v11 = vadd.f32 %v3190_v21, %v2301_v20  ;;  %v3225_v24 = vadd.f32 %v3224_v10, %v3223_v22 }
 0x2dc   :  { %v2529_v37 = vadd.f32 %v3225_v24, %v2415_v11 }
 0x2de   :  { %v2537_v8 = vadd.f32 %v2943_v36, %v2529_v37 }
 0x2e0   :  { %v2538_v9 = vmax.f32 %v2537_v8, 0.0 }
 0x2e2   :  { %3252 = vmatmul.mubr.msk.f32.vlgmr.msra.gmra.mrb[10].mxu0 %vm2554_vm12, %v2538_v9 }
 0x3b5   :  { %v2624_v15 = vpop.f32.mrb[10].mxu0 }
 0x3b6   :  { %v2625_v17 = vadd.f32 %v2944_v23, %v2624_v15  ;;  %v3253_v28 = vpop.f32.mrb[11].mxu0 }
 0x3b8   :  { %v2629_v13 = vsel %vm2628_vm13, %v2625_v17, 0.0 }
 0x3b9   :  { %2630 = vadd.xlane.f32.xlu1 %v2629_v13 }
 0x446   :  { %v2631_v25 = vpop.xlane.xlu1 %2630 }
 0x447   :  { %v2633_v18 = vmul.f32 0.16666667, %v2631_v25 }
 0x449   :  { %v2634_v30 = vsub.f32 %v2625_v17, %v2633_v18 }
 0x44b   :  { %2637 = vperm.xlu0 %3569, %v2634_v30  }
 0x4ca   :  { %v2638_v19 = vpop.permute.xlu0 %2637 }
 0x4cb   :  { %v2640_v29 = vadd.f32 %v2638_v19, %v2625_v17 }
 0x4cd   :  { %2641 = vst.msk [vmem:[#allocation2] sm:$0x3] %vm2628_vm13, %v2640_v29 }
 0x4ce   :  { %3583 = shalt.err (!%p3580_p4)
}
 0x4cf   :  { %s3584_s18 = scalar_lea.hbm %s4776_s7, 32 }
 0x4d0   :  { %p3585_p5 = scmp.ne.s32.totalorder %s4776_s7, %s3584_s18  ;;  %p3588_p6 = scmp.lt.u32.totalorder %s3584_s18, %s4776_s7 }
 0x4d2   :  { %p3590_p7 = pnand %p3588_p6, %p3585_p5 }
 0x4d4   :  { %3593 = shalt.err (!%p3590_p7)
}
 0x4d5   :  { %2651 = dma.vmem_to_hbm [thread:$0]  %s2649_s2, 32, %s4776_s7, [#allocation3]  }
 0x4d6   :  { %3594 = dma.done.wait [#allocation3], 32  }
 0x4d7   :  { %3595 = vsyncadd [#allocation3], 4294967264 }
 0x4d8   :  { %2655 = vsyncpa [#allocation3], 1 }

</bundles_post_ra>
